<compile_context>
chip_gen: v6e
topology: v6e:2x2x1
jax: 0.10.0
libtpu: 0.0.40
codegen_flags: <defaults>
</compile_context>

<pallas_src>
import functools

import numpy as np
import jax
import jax.numpy as jnp
from jax.experimental import pallas as pl
from jax.experimental.pallas import tpu as pltpu

BN_EPS = 1e-5                     # PyTorch BatchNorm default eps
LANE = 128                        # padded conv-channel width (lane-dense)
VMEM_LIMIT = 32 * 1024 * 1024


def _round_up(x, m):
    return (x + m - 1) // m * m


# ----------------------------------------------------------------------------
# Pallas kernel: 3x3 conv (+ folded BN + ReLU) on one image, taps in VMEM
# ----------------------------------------------------------------------------
def _conv3x3_kernel(x_ref, w_ref, shift_ref, o_ref, *, Ho, Wo, Wp8):
    # x_ref:     ((Ho+3)*Wp8, Cin)  bf16  -- padded image, rows = h*Wp8 + w
    # w_ref:     (9, Cin, Coutp)    bf16  -- BN scale folded in
    # shift_ref: (1, Coutp)         f32
    # o_ref:     (Ho*Wp8, Coutp)    bf16  -- rows = oh*Wp8 + ow (ow >= Wo zeroed)
    M = Ho * Wp8
    coutp = w_ref.shape[-1]
    acc = jnp.zeros((M, coutp), jnp.float32)
    for t in range(9):
        di, dj = divmod(t, 3)
        xs = x_ref[pl.ds(di * Wp8 + dj, M), :]                 # (M, Cin) bf16
        acc = acc + jnp.dot(xs, w_ref[t], preferred_element_type=jnp.float32)
    y = jnp.maximum(acc + shift_ref[...], 0.0)
    # zero the garbage columns (flattened ow >= Wo) so downstream stays clean
    ow = jax.lax.broadcasted_iota(jnp.int32, (M, 1), 0) % Wp8
    y = jnp.where(ow < Wo, y, 0.0)
    o_ref[...] = y.astype(o_ref.dtype)


def conv_bn_relu(x_bhwc, w9, shift, pad):
    """x_bhwc: (B,H,W,Cin) bf16 -> (B,Ho,Wo,Coutp) bf16 (conv+BN+ReLU fused)."""
    B, H, W, cin = x_bhwc.shape
    Ho, Wo = H + 2 * pad - 2, W + 2 * pad - 2
    Wp8 = _round_up(W + 2 * pad, 8)
    coutp = w9.shape[-1]
    # pad: conv padding + one extra zero row at the bottom + zeros to Wp8 wide
    xp = jnp.pad(x_bhwc, ((0, 0), (pad, pad + 1), (pad, Wp8 - W - pad), (0, 0)))
    x_flat = xp.reshape(B, (Ho + 3) * Wp8, cin)

    kernel = functools.partial(_conv3x3_kernel, Ho=Ho, Wo=Wo, Wp8=Wp8)
    out_flat = pl.pallas_call(
        kernel,
        out_shape=jax.ShapeDtypeStruct((B, Ho * Wp8, coutp), jnp.bfloat16),
        grid=(B,),
        in_specs=[
            pl.BlockSpec((None, (Ho + 3) * Wp8, cin), lambda b: (b, 0, 0)),
            pl.BlockSpec((9, cin, coutp), lambda b: (0, 0, 0)),
            pl.BlockSpec((1, coutp), lambda b: (0, 0)),
        ],
        out_specs=pl.BlockSpec((None, Ho * Wp8, coutp), lambda b: (b, 0, 0)),
        compiler_params=pltpu.CompilerParams(
            dimension_semantics=("parallel",),
            vmem_limit_bytes=VMEM_LIMIT),
    )(x_flat, w9, shift)
    return out_flat.reshape(B, Ho, Wp8, coutp)[:, :, :Wo, :]


# ----------------------------------------------------------------------------
# Pallas kernel: fused fc1 (K-tiled) -> fc2 -> [fc3 | fc4] heads
# ----------------------------------------------------------------------------
def _fc_stack_kernel(x_ref, w1_ref, shift1_ref, w2_ref, shift2_ref,
                     wh_ref, bh_ref, o_ref, acc_ref, *, action_size):
    k = pl.program_id(0)

    @pl.when(k == 0)
    def _():
        acc_ref[...] = jnp.zeros_like(acc_ref)

    acc_ref[...] += jnp.dot(x_ref[...], w1_ref[...],
                            preferred_element_type=jnp.float32)

    @pl.when(k == pl.num_programs(0) - 1)
    def _():
        h1 = jnp.maximum(acc_ref[...] + shift1_ref[...], 0.0)     # (B,1024) f32
        # TODO(synk): dropout skipped (inference / eval mode, training=False)
        h2 = jnp.dot(h1.astype(jnp.bfloat16), w2_ref[...],
                     preferred_element_type=jnp.float32)
        h2 = jnp.maximum(h2 + shift2_ref[...], 0.0)               # (B,512) f32
        y = jnp.dot(h2.astype(jnp.bfloat16), wh_ref[...],
                    preferred_element_type=jnp.float32) + bh_ref[...]
        col = jax.lax.broadcasted_iota(jnp.int32, y.shape, 1)
        is_logit = col < action_size
        logits = jnp.where(is_logit, y, -jnp.inf)
        m = jnp.max(logits, axis=-1, keepdims=True)
        lse = m + jnp.log(jnp.sum(jnp.exp(logits - m), axis=-1, keepdims=True))
        out = jnp.where(is_logit, y - lse,
                        jnp.where(col == action_size, jnp.tanh(y), 0.0))
        o_ref[...] = out.astype(o_ref.dtype)


def fc_stack(x, w1, shift1, w2, shift2, wh, bh, action_size):
    B, K1 = x.shape
    n1, n2, nh = w1.shape[1], w2.shape[1], wh.shape[1]
    tk = K1
    for cand in (1024, 512, 256, 128):
        if K1 % cand == 0:
            tk = cand
            break
    kernel = functools.partial(_fc_stack_kernel, action_size=action_size)
    return pl.pallas_call(
        kernel,
        out_shape=jax.ShapeDtypeStruct((B, nh), jnp.float32),
        grid=(K1 // tk,),
        in_specs=[
            pl.BlockSpec((B, tk), lambda k: (0, k)),
            pl.BlockSpec((tk, n1), lambda k: (k, 0)),
            pl.BlockSpec((1, n1), lambda k: (0, 0)),
            pl.BlockSpec((w2.shape[0], n2), lambda k: (0, 0)),
            pl.BlockSpec((1, n2), lambda k: (0, 0)),
            pl.BlockSpec((wh.shape[0], nh), lambda k: (0, 0)),
            pl.BlockSpec((1, nh), lambda k: (0, 0)),
        ],
        out_specs=pl.BlockSpec((B, nh), lambda k: (0, 0)),
        scratch_shapes=[pltpu.VMEM((B, n1), jnp.float32)],
        compiler_params=pltpu.CompilerParams(
            dimension_semantics=("arbitrary",),
            vmem_limit_bytes=VMEM_LIMIT),
    )(x, w1, shift1, w2, shift2, wh, bh)


# ----------------------------------------------------------------------------
# One-time host-side parameter preparation (folding / padding / permutation)
# ----------------------------------------------------------------------------
def prepare_params(params):
    def fold_bn(bias, gamma, beta, mean, var):
        scale = gamma / jnp.sqrt(var + BN_EPS)
        shift = beta + (bias - mean) * scale
        return scale, shift

    prep = {}
    # convs: fold BN scale into weights, pad Cin (layers 2-4) and Cout to LANE
    for i, name in enumerate(("conv1", "conv2", "conv3", "conv4")):
        w, b, g, be, mu, var = params[name]
        scale, shift = fold_bn(b, g, be, mu, var)
        kh, kw, cin, cout = w.shape
        coutp = _round_up(cout, LANE)
        cin_p = cin if i == 0 else _round_up(cin, LANE)
        wf = (w * scale[None, None, None, :]).reshape(kh * kw, cin, cout)
        wf = jnp.pad(wf, ((0, 0), (0, cin_p - cin), (0, coutp - cout)))
        prep[name] = (wf.astype(jnp.bfloat16),
                      jnp.pad(shift, (0, coutp - cout)).reshape(1, coutp)
                      .astype(jnp.float32))

    # fc1: permute rows (C,H,W)->(H,W,C) so it consumes NHWC-flattened conv out
    c0 = params["conv4"][0].shape[3]
    w1, b1, g1, be1, mu1, v1 = params["fc1"]
    hw = w1.shape[0] // c0
    h4 = int(round(hw ** 0.5))
    scale1, shift1 = fold_bn(b1, g1, be1, mu1, v1)
    w1p = jnp.transpose(w1.reshape(c0, h4, h4, w1.shape[1]), (1, 2, 0, 3))
    w1p = w1p.reshape(w1.shape[0], w1.shape[1]) * scale1[None, :]
    prep["fc1"] = (w1p.astype(jnp.bfloat16),
                   shift1.reshape(1, -1).astype(jnp.float32))

    w2, b2, g2, be2, mu2, v2 = params["fc2"]
    scale2, shift2 = fold_bn(b2, g2, be2, mu2, v2)
    prep["fc2"] = ((w2 * scale2[None, :]).astype(jnp.bfloat16),
                   shift2.reshape(1, -1).astype(jnp.float32))

    # heads: [fc3 | fc4] fused into one lane-padded matmul
    w3, b3 = params["fc3"]
    w4, b4 = params["fc4"]
    a = w3.shape[1]
    nh = _round_up(a + 1, LANE)
    wh = jnp.pad(jnp.concatenate([w3, w4], axis=1), ((0, 0), (0, nh - (a + 1))))
    bh = jnp.pad(jnp.concatenate([b3, b4]), (0, nh - (a + 1)))
    prep["heads"] = (wh.astype(jnp.bfloat16),
                     bh.reshape(1, -1).astype(jnp.float32), a)
    prep["meta"] = (c0, h4)
    return prep


# ----------------------------------------------------------------------------
# Full forward pass (eval mode: BN uses running stats, dropout = identity)
# ----------------------------------------------------------------------------
def carcassonne_forward(prep, s_nchw):
    x = jnp.transpose(s_nchw, (0, 2, 3, 1)).astype(jnp.bfloat16)   # NCHW -> NHWC

    x = conv_bn_relu(x, *prep["conv1"], pad=1)
    x = conv_bn_relu(x, *prep["conv2"], pad=1)
    x = conv_bn_relu(x, *prep["conv3"], pad=0)
    x = conv_bn_relu(x, *prep["conv4"], pad=0)

    c0, h4 = prep["meta"]
    B = x.shape[0]
    # strip channel padding; fc1 rows were permuted to NHWC order host-side
    x_fc = x[:, :, :, :c0].reshape(B, h4 * h4 * c0)

    w1, shift1 = prep["fc1"]
    w2, shift2 = prep["fc2"]
    wh, bh, a = prep["heads"]
    out = fc_stack(x_fc, w1, shift1, w2, shift2, wh, bh, a)
    return out[:, :a], out[:, a:a + 1]


# ----------------------------------------------------------------------------
# Deterministic synthetic parameter init
# ----------------------------------------------------------------------------
def _bn_params(key, n):
    k1, k2, k3, k4 = jax.random.split(key, 4)
    gamma = 1.0 + 0.1 * jax.random.normal(k1, (n,), jnp.float32)
    beta = 0.1 * jax.random.normal(k2, (n,), jnp.float32)
    mean = 0.1 * jax.random.normal(k3, (n,), jnp.float32)
    var = 1.0 + 0.5 * jax.random.uniform(k4, (n,), jnp.float32)
    return gamma, beta, mean, var


def _conv_layer(key, cin, cout):
    k0, k1, k2 = jax.random.split(key, 3)
    w = jax.random.normal(k0, (3, 3, cin, cout), jnp.float32) / np.sqrt(9 * cin)
    b = 0.05 * jax.random.normal(k1, (cout,), jnp.float32)
    return (w, b) + _bn_params(k2, cout)


def _fc_bn_layer(key, kin, kout):
    k0, k1, k2 = jax.random.split(key, 3)
    w = jax.random.normal(k0, (kin, kout), jnp.float32) / np.sqrt(kin)
    b = 0.05 * jax.random.normal(k1, (kout,), jnp.float32)
    return (w, b) + _bn_params(k2, kout)


def _fc_layer(key, kin, kout):
    k0, k1 = jax.random.split(key, 2)
    w = jax.random.normal(k0, (kin, kout), jnp.float32) / np.sqrt(kin)
    b = 0.05 * jax.random.normal(k1, (kout,), jnp.float32)
    return (w, b)


def init_params(key, in_channels, num_channels, fc1_in, action_size):
    ks = jax.random.split(key, 8)
    return {
        "conv1": _conv_layer(ks[0], in_channels, num_channels),
        "conv2": _conv_layer(ks[1], num_channels, num_channels),
        "conv3": _conv_layer(ks[2], num_channels, num_channels),
        "conv4": _conv_layer(ks[3], num_channels, num_channels),
        "fc1": _fc_bn_layer(ks[4], fc1_in, 1024),
        "fc2": _fc_bn_layer(ks[5], 1024, 512),
        "fc3": _fc_layer(ks[6], 512, action_size),
        "fc4": _fc_layer(ks[7], 512, 1),
    }


# ----------------------------------------------------------------------------
# Pure-JAX reference (no Pallas, f32) for correctness checking
# ----------------------------------------------------------------------------
def reference_forward(params, s_nchw):
    def conv(x, w, b, pad):
        y = jax.lax.conv_general_dilated(
            x, w, window_strides=(1, 1),
            padding=[(pad, pad), (pad, pad)],
            dimension_numbers=("NHWC", "HWIO", "NHWC"),
            precision=jax.lax.Precision.HIGHEST)
        return y + b

    def bn(x, g, be, mu, var):
        return (x - mu) / jnp.sqrt(var + BN_EPS) * g + be

    x = jnp.transpose(s_nchw, (0, 2, 3, 1))
    for name, pad in (("conv1", 1), ("conv2", 1), ("conv3", 0), ("conv4", 0)):
        w, b, g, be, mu, var = params[name]
        x = jax.nn.relu(bn(conv(x, w, b, pad), g, be, mu, var))
    B = x.shape[0]
    x = jnp.transpose(x, (0, 3, 1, 2)).reshape(B, -1)
    for name in ("fc1", "fc2"):
        w, b, g, be, mu, var = params[name]
        x = jax.nn.relu(bn(x @ w + b, g, be, mu, var))
    w3, b3 = params["fc3"]
    w4, b4 = params["fc4"]
    pi = jax.nn.log_softmax(x @ w3 + b3, axis=1)
    v = jnp.tanh(x @ w4 + b4)
    return pi, v


# ----------------------------------------------------------------------------
if __name__ == "__main__":
    # Small stand-ins for the module's constructor parameters.
    BOARD = 4                 # stand-in for BOARD_SIZE=35
    PLAYER_NB = 2
    NUM_CHANNELS = 32
    BATCH = 2

    board3 = BOARD * 3                                   # spatial size seen by convs = 12
    in_channels = 5 + 5 + PLAYER_NB * 4 + PLAYER_NB + 2  # 22
    action_size = BOARD * BOARD * 9 + 1                  # 145
    fc1_in = NUM_CHANNELS * (board3 - 4) * (board3 - 4)  # 32 * 8 * 8 = 2048

    key = jax.random.PRNGKey(0)
    pkey, xkey = jax.random.split(key)
    params = init_params(pkey, in_channels, NUM_CHANNELS, fc1_in, action_size)
    s = jax.random.normal(xkey, (BATCH, in_channels, board3, board3), jnp.float32)

    prep = prepare_params(params)            # one-time host-side weight prep
    pi, v = carcassonne_forward(prep, s)
    jax.block_until_ready((pi, v))
    assert pi.shape == (BATCH, action_size) and v.shape == (BATCH, 1)

    pi_ref, v_ref = reference_forward(params, s)
    np.testing.assert_allclose(np.asarray(pi), np.asarray(pi_ref), rtol=5e-2, atol=5e-2)
    np.testing.assert_allclose(np.asarray(v), np.asarray(v_ref), rtol=5e-2, atol=5e-2)

    print("KERNEL_OK")
</pallas_src>

<mosaic_0001>
module attributes {stable_mosaic.version = 11 : i64} {
  func.func @_conv3x3_kernel(%arg0: i32, %arg1: memref<1x240x22xbf16, #tpu.memory_space<vmem>>, %arg2: memref<9x22x128xbf16, #tpu.memory_space<vmem>>, %arg3: memref<1x128xf32, #tpu.memory_space<vmem>>, %arg4: memref<1x192x128xbf16, #tpu.memory_space<vmem>>) attributes {dimension_semantics = [#tpu.dimension_semantics<parallel>], iteration_bounds = array<i64: 2>, scalar_prefetch = 0 : i64, scratch_operands = 0 : i64, tpu.core_type = #tpu.core_type<tc>, window_params = [{transform_indices = @transform_0, window_bounds = array<i64: 1, 240, 22>}, {pipeline_mode = #tpu.pipeline_mode<synchronous>, transform_indices = @transform_1, window_bounds = array<i64: 9, 22, 128>}, {pipeline_mode = #tpu.pipeline_mode<synchronous>, transform_indices = @transform_2, window_bounds = array<i64: 1, 128>}, {transform_indices = @transform_3, window_bounds = array<i64: 1, 192, 128>}]} {
    %cst = arith.constant 0.000000e+00 : f32
    %0 = vector.broadcast %cst : f32 to vector<192x128xf32>
    %c0 = arith.constant 0 : index
    %c0_0 = arith.constant 0 : index
    %c0_1 = arith.constant 0 : index
    %1 = vector.load %arg1[%c0, %c0_0, %c0_1] : memref<1x240x22xbf16, #tpu.memory_space<vmem>>, vector<1x192x22xbf16>
    %2 = vector.shape_cast %1 : vector<1x192x22xbf16> to vector<192x22xbf16>
    %c0_2 = arith.constant 0 : index
    %c0_3 = arith.constant 0 : index
    %c0_4 = arith.constant 0 : index
    %3 = vector.load %arg2[%c0_2, %c0_3, %c0_4] : memref<9x22x128xbf16, #tpu.memory_space<vmem>>, vector<1x22x128xbf16>
    %4 = vector.shape_cast %3 : vector<1x22x128xbf16> to vector<22x128xbf16>
    %cst_5 = arith.constant dense<0.000000e+00> : vector<192x128xf32>
    %5 = tpu.matmul %2, %4, %cst_5 {dimension_numbers = #tpu.dot_dimension_numbers<[1], [0], [0], [1], [0, 0, 1, 1], [], []>} : vector<192x22xbf16>, vector<22x128xbf16>, vector<192x128xf32> -> vector<192x128xf32>
    %6 = arith.addf %0, %5 : vector<192x128xf32>
    %c0_6 = arith.constant 0 : index
    %c1 = arith.constant 1 : index
    %c0_7 = arith.constant 0 : index
    %7 = vector.load %arg1[%c0_6, %c1, %c0_7] : memref<1x240x22xbf16, #tpu.memory_space<vmem>>, vector<1x192x22xbf16>
    %8 = vector.shape_cast %7 : vector<1x192x22xbf16> to vector<192x22xbf16>
    %c1_8 = arith.constant 1 : index
    %c0_9 = arith.constant 0 : index
    %c0_10 = arith.constant 0 : index
    %9 = vector.load %arg2[%c1_8, %c0_9, %c0_10] : memref<9x22x128xbf16, #tpu.memory_space<vmem>>, vector<1x22x128xbf16>
    %10 = vector.shape_cast %9 : vector<1x22x128xbf16> to vector<22x128xbf16>
    %cst_11 = arith.constant dense<0.000000e+00> : vector<192x128xf32>
    %11 = tpu.matmul %8, %10, %cst_11 {dimension_numbers = #tpu.dot_dimension_numbers<[1], [0], [0], [1], [0, 0, 1, 1], [], []>} : vector<192x22xbf16>, vector<22x128xbf16>, vector<192x128xf32> -> vector<192x128xf32>
    %12 = arith.addf %6, %11 : vector<192x128xf32>
    %c0_12 = arith.constant 0 : index
    %c2 = arith.constant 2 : index
    %c0_13 = arith.constant 0 : index
    %13 = vector.load %arg1[%c0_12, %c2, %c0_13] : memref<1x240x22xbf16, #tpu.memory_space<vmem>>, vector<1x192x22xbf16>
    %14 = vector.shape_cast %13 : vector<1x192x22xbf16> to vector<192x22xbf16>
    %c2_14 = arith.constant 2 : index
    %c0_15 = arith.constant 0 : index
    %c0_16 = arith.constant 0 : index
    %15 = vector.load %arg2[%c2_14, %c0_15, %c0_16] : memref<9x22x128xbf16, #tpu.memory_space<vmem>>, vector<1x22x128xbf16>
    %16 = vector.shape_cast %15 : vector<1x22x128xbf16> to vector<22x128xbf16>
    %cst_17 = arith.constant dense<0.000000e+00> : vector<192x128xf32>
    %17 = tpu.matmul %14, %16, %cst_17 {dimension_numbers = #tpu.dot_dimension_numbers<[1], [0], [0], [1], [0, 0, 1, 1], [], []>} : vector<192x22xbf16>, vector<22x128xbf16>, vector<192x128xf32> -> vector<192x128xf32>
    %18 = arith.addf %12, %17 : vector<192x128xf32>
    %c0_18 = arith.constant 0 : index
    %c16 = arith.constant 16 : index
    %c0_19 = arith.constant 0 : index
    %19 = vector.load %arg1[%c0_18, %c16, %c0_19] : memref<1x240x22xbf16, #tpu.memory_space<vmem>>, vector<1x192x22xbf16>
    %20 = vector.shape_cast %19 : vector<1x192x22xbf16> to vector<192x22xbf16>
    %c3 = arith.constant 3 : index
    %c0_20 = arith.constant 0 : index
    %c0_21 = arith.constant 0 : index
    %21 = vector.load %arg2[%c3, %c0_20, %c0_21] : memref<9x22x128xbf16, #tpu.memory_space<vmem>>, vector<1x22x128xbf16>
    %22 = vector.shape_cast %21 : vector<1x22x128xbf16> to vector<22x128xbf16>
    %cst_22 = arith.constant dense<0.000000e+00> : vector<192x128xf32>
    %23 = tpu.matmul %20, %22, %cst_22 {dimension_numbers = #tpu.dot_dimension_numbers<[1], [0], [0], [1], [0, 0, 1, 1], [], []>} : vector<192x22xbf16>, vector<22x128xbf16>, vector<192x128xf32> -> vector<192x128xf32>
    %24 = arith.addf %18, %23 : vector<192x128xf32>
    %c0_23 = arith.constant 0 : index
    %c17 = arith.constant 17 : index
    %c0_24 = arith.constant 0 : index
    %25 = vector.load %arg1[%c0_23, %c17, %c0_24] : memref<1x240x22xbf16, #tpu.memory_space<vmem>>, vector<1x192x22xbf16>
    %26 = vector.shape_cast %25 : vector<1x192x22xbf16> to vector<192x22xbf16>
    %c4 = arith.constant 4 : index
    %c0_25 = arith.constant 0 : index
    %c0_26 = arith.constant 0 : index
    %27 = vector.load %arg2[%c4, %c0_25, %c0_26] : memref<9x22x128xbf16, #tpu.memory_space<vmem>>, vector<1x22x128xbf16>
    %28 = vector.shape_cast %27 : vector<1x22x128xbf16> to vector<22x128xbf16>
    %cst_27 = arith.constant dense<0.000000e+00> : vector<192x128xf32>
    %29 = tpu.matmul %26, %28, %cst_27 {dimension_numbers = #tpu.dot_dimension_numbers<[1], [0], [0], [1], [0, 0, 1, 1], [], []>} : vector<192x22xbf16>, vector<22x128xbf16>, vector<192x128xf32> -> vector<192x128xf32>
    %30 = arith.addf %24, %29 : vector<192x128xf32>
    %c0_28 = arith.constant 0 : index
    %c18 = arith.constant 18 : index
    %c0_29 = arith.constant 0 : index
    %31 = vector.load %arg1[%c0_28, %c18, %c0_29] : memref<1x240x22xbf16, #tpu.memory_space<vmem>>, vector<1x192x22xbf16>
    %32 = vector.shape_cast %31 : vector<1x192x22xbf16> to vector<192x22xbf16>
    %c5 = arith.constant 5 : index
    %c0_30 = arith.constant 0 : index
    %c0_31 = arith.constant 0 : index
    %33 = vector.load %arg2[%c5, %c0_30, %c0_31] : memref<9x22x128xbf16, #tpu.memory_space<vmem>>, vector<1x22x128xbf16>
    %34 = vector.shape_cast %33 : vector<1x22x128xbf16> to vector<22x128xbf16>
    %cst_32 = arith.constant dense<0.000000e+00> : vector<192x128xf32>
    %35 = tpu.matmul %32, %34, %cst_32 {dimension_numbers = #tpu.dot_dimension_numbers<[1], [0], [0], [1], [0, 0, 1, 1], [], []>} : vector<192x22xbf16>, vector<22x128xbf16>, vector<192x128xf32> -> vector<192x128xf32>
    %36 = arith.addf %30, %35 : vector<192x128xf32>
    %c0_33 = arith.constant 0 : index
    %c32 = arith.constant 32 : index
    %c0_34 = arith.constant 0 : index
    %37 = vector.load %arg1[%c0_33, %c32, %c0_34] : memref<1x240x22xbf16, #tpu.memory_space<vmem>>, vector<1x192x22xbf16>
    %38 = vector.shape_cast %37 : vector<1x192x22xbf16> to vector<192x22xbf16>
    %c6 = arith.constant 6 : index
    %c0_35 = arith.constant 0 : index
    %c0_36 = arith.constant 0 : index
    %39 = vector.load %arg2[%c6, %c0_35, %c0_36] : memref<9x22x128xbf16, #tpu.memory_space<vmem>>, vector<1x22x128xbf16>
    %40 = vector.shape_cast %39 : vector<1x22x128xbf16> to vector<22x128xbf16>
    %cst_37 = arith.constant dense<0.000000e+00> : vector<192x128xf32>
    %41 = tpu.matmul %38, %40, %cst_37 {dimension_numbers = #tpu.dot_dimension_numbers<[1], [0], [0], [1], [0, 0, 1, 1], [], []>} : vector<192x22xbf16>, vector<22x128xbf16>, vector<192x128xf32> -> vector<192x128xf32>
    %42 = arith.addf %36, %41 : vector<192x128xf32>
    %c0_38 = arith.constant 0 : index
    %c33 = arith.constant 33 : index
    %c0_39 = arith.constant 0 : index
    %43 = vector.load %arg1[%c0_38, %c33, %c0_39] : memref<1x240x22xbf16, #tpu.memory_space<vmem>>, vector<1x192x22xbf16>
    %44 = vector.shape_cast %43 : vector<1x192x22xbf16> to vector<192x22xbf16>
    %c7 = arith.constant 7 : index
    %c0_40 = arith.constant 0 : index
    %c0_41 = arith.constant 0 : index
    %45 = vector.load %arg2[%c7, %c0_40, %c0_41] : memref<9x22x128xbf16, #tpu.memory_space<vmem>>, vector<1x22x128xbf16>
    %46 = vector.shape_cast %45 : vector<1x22x128xbf16> to vector<22x128xbf16>
    %cst_42 = arith.constant dense<0.000000e+00> : vector<192x128xf32>
    %47 = tpu.matmul %44, %46, %cst_42 {dimension_numbers = #tpu.dot_dimension_numbers<[1], [0], [0], [1], [0, 0, 1, 1], [], []>} : vector<192x22xbf16>, vector<22x128xbf16>, vector<192x128xf32> -> vector<192x128xf32>
    %48 = arith.addf %42, %47 : vector<192x128xf32>
    %c0_43 = arith.constant 0 : index
    %c34 = arith.constant 34 : index
    %c0_44 = arith.constant 0 : index
    %49 = vector.load %arg1[%c0_43, %c34, %c0_44] : memref<1x240x22xbf16, #tpu.memory_space<vmem>>, vector<1x192x22xbf16>
    %50 = vector.shape_cast %49 : vector<1x192x22xbf16> to vector<192x22xbf16>
    %c8 = arith.constant 8 : index
    %c0_45 = arith.constant 0 : index
    %c0_46 = arith.constant 0 : index
    %51 = vector.load %arg2[%c8, %c0_45, %c0_46] : memref<9x22x128xbf16, #tpu.memory_space<vmem>>, vector<1x22x128xbf16>
    %52 = vector.shape_cast %51 : vector<1x22x128xbf16> to vector<22x128xbf16>
    %cst_47 = arith.constant dense<0.000000e+00> : vector<192x128xf32>
    %53 = tpu.matmul %50, %52, %cst_47 {dimension_numbers = #tpu.dot_dimension_numbers<[1], [0], [0], [1], [0, 0, 1, 1], [], []>} : vector<192x22xbf16>, vector<22x128xbf16>, vector<192x128xf32> -> vector<192x128xf32>
    %54 = arith.addf %48, %53 : vector<192x128xf32>
    %c0_48 = arith.constant 0 : index
    %c0_49 = arith.constant 0 : index
    %55 = vector.load %arg3[%c0_48, %c0_49] : memref<1x128xf32, #tpu.memory_space<vmem>>, vector<1x128xf32>
    %56 = vector.broadcast %55 : vector<1x128xf32> to vector<192x128xf32>
    %57 = arith.addf %54, %56 : vector<192x128xf32>
    %cst_50 = arith.constant 0.000000e+00 : f32
    %58 = vector.broadcast %cst_50 : f32 to vector<192x128xf32>
    %59 = arith.maximumf %57, %58 : vector<192x128xf32>
    %60 = tpu.iota {dimensions = array<i32: 0>} : vector<192x1xi32>
    %c16_i32 = arith.constant 16 : i32
    %c0_i32 = arith.constant 0 : i32
    %61 = arith.cmpi eq, %c16_i32, %c0_i32 : i32
    %c1_i32 = arith.constant 1 : i32
    %62 = arith.select %61, %c1_i32, %c16_i32 : i32
    %63 = vector.broadcast %62 : i32 to vector<192x1xi32>
    %64 = arith.remsi %60, %63 : vector<192x1xi32>
    %c0_i32_51 = arith.constant 0 : i32
    %65 = vector.broadcast %c0_i32_51 : i32 to vector<192x1xi32>
    %66 = arith.cmpi ne, %64, %65 : vector<192x1xi32>
    %c0_i32_52 = arith.constant 0 : i32
    %67 = vector.broadcast %c0_i32_52 : i32 to vector<192x1xi32>
    %68 = arith.cmpi slt, %64, %67 : vector<192x1xi32>
    %c0_i32_53 = arith.constant 0 : i32
    %69 = arith.cmpi slt, %62, %c0_i32_53 : i32
    %70 = vector.broadcast %69 : i1 to vector<192x1xi1>
    %71 = vector.broadcast %70 : vector<192x1xi1> to vector<192x1xi1>
    %72 = arith.xori %68, %71 : vector<192x1xi1>
    %73 = arith.andi %72, %66 : vector<192x1xi1>
    %74 = vector.broadcast %62 : i32 to vector<192x1xi32>
    %75 = arith.addi %64, %74 : vector<192x1xi32>
    %76 = arith.select %73, %75, %64 : vector<192x1xi1>, vector<192x1xi32>
    %c12_i32 = arith.constant 12 : i32
    %77 = vector.broadcast %c12_i32 : i32 to vector<192x1xi32>
    %78 = arith.cmpi slt, %76, %77 : vector<192x1xi32>
    %cst_54 = arith.constant 0.000000e+00 : f32
    %79 = vector.shape_cast %78 : vector<192x1xi1> to vector<192x1xi1>
    %80 = vector.broadcast %79 : vector<192x1xi1> to vector<192x128xi1>
    %81 = vector.broadcast %cst_54 : f32 to vector<192x128xf32>
    %82 = arith.select %80, %59, %81 : vector<192x128xi1>, vector<192x128xf32>
    %83 = arith.truncf %82 : vector<192x128xf32> to vector<192x128xbf16>
    %c0_55 = arith.constant 0 : index
    %c0_56 = arith.constant 0 : index
    %c0_57 = arith.constant 0 : index
    %84 = vector.load %arg4[%c0_55, %c0_56, %c0_57] : memref<1x192x128xbf16, #tpu.memory_space<vmem>>, vector<1x192x128xbf16>
    %85 = vector.shape_cast %84 : vector<1x192x128xbf16> to vector<192x128xbf16>
    %86 = vector.shape_cast %83 : vector<192x128xbf16> to vector<1x192x128xbf16>
    tpu.vector_store %arg4[%c0_55, %c0_56, %c0_57], %86 {strides = array<i32>} : memref<1x192x128xbf16, #tpu.memory_space<vmem>>, vector<1x192x128xbf16>,
    return
  }
  func.func @transform_0(%arg0: i32) -> (i32, i32, i32) {
    %c0_i32 = arith.constant 0 : i32
    %c0_i32_0 = arith.constant 0 : i32
    %c0_i32_1 = arith.constant 0 : i32
    return %arg0, %c0_i32, %c0_i32_0 : i32, i32, i32
  }
  func.func @transform_1(%arg0: i32) -> (i32, i32, i32) {
    %c0_i32 = arith.constant 0 : i32
    %c0_i32_0 = arith.constant 0 : i32
    %c0_i32_1 = arith.constant 0 : i32
    %c0_i32_2 = arith.constant 0 : i32
    return %c0_i32, %c0_i32_0, %c0_i32_1 : i32, i32, i32
  }
  func.func @transform_2(%arg0: i32) -> (i32, i32) {
    %c0_i32 = arith.constant 0 : i32
    %c0_i32_0 = arith.constant 0 : i32
    %c0_i32_1 = arith.constant 0 : i32
    return %c0_i32, %c0_i32_0 : i32, i32
  }
  func.func @transform_3(%arg0: i32) -> (i32, i32, i32) {
    %c0_i32 = arith.constant 0 : i32
    %c0_i32_0 = arith.constant 0 : i32
    %c0_i32_1 = arith.constant 0 : i32
    return %arg0, %c0_i32, %c0_i32_0 : i32, i32, i32
  }
}

</mosaic_0001>

<bundles_post_ra>
// kernel: tpu_custom_call.1
= control target key start
LH: loop header
LB: loop body
LE: loop exit
PB: predicated region body
PF: predicated region fallthrough
CT: control target
= control target key end

     0   :  { %8 = vsyncpa [#allocation3], 0  ;;  %s5399_s0 = inlined_call_operand.vmem [shape: bf16[2,240,22], index: 0, kind: input, shape index: {}]   ;;  %s5400_s1 = inlined_call_operand.vmem [shape: bf16[9,22,128], index: 1, kind: input, shape index: {}]   ;;  %s5401_s2 = inlined_call_operand.vmem [shape: f32[1,128], index: 2, kind: input, shape index: {}]   ;;  %s5402_s3 = inlined_call_operand.hbm [shape: bf16[2,192,128], index: 3, kind: output, shape index: {}]  }
   0x1   :  { %10 = vsyncpa [#allocation3 + $0x1], 0  ;;  %s4386_s12 = smov 0   ;;  %s4388_s13 = smov 0  }
   0x2   :  { %s4390_s14 = smov 0   ;;  %s4392_s15 = smov 0  }
   0x3 LB: > { %s4407_s16 = sadd.s32 4294967295, %s4361_s15   ;;  %s3437_s17 = sadd.s32 4294967294, %s4361_s15   ;;  %s4361_s15 = sphi %s4392_s15, %s5472_s15   ;;  %s4357_s14 = sphi %s4390_s14, %s5471_s14   ;;  %s4353_s13 = sphi %s4388_s13, %s5470_s13   ;;  %s4349_s12 = sphi %s4386_s12, %s5469_s12  }
   0x4   : > { %s4411_s18 = sadd.s32 1, %s4361_s15   ;;  %s91_s19 = sadd.s32 1, %s4357_s14 }
   0x5   : > { %s88_s20 = ssub.s32 %s4361_s15, %s4411_s18  ;;  %p101_p0 = scmp.ne.s32.totalorder %s4357_s14, %s4353_s13 }
   0x6   : > { %p89_p1 = scmp.eq.s32.totalorder %s88_s20, 0  ;;  %p102_p2 = scmp.eq.s32.totalorder %s4407_s16, 1 }
   0x7   : > { %p107_p3 = scmp.ne.s32.totalorder %s4353_s13, %s4349_s12  ;;  %p108_p4 = scmp.eq.s32.totalorder %s3437_s17, 1 }
   0x8   : > { %s4422_s21 = scalar_select %p89_p1, %s4357_s14, %s91_s19  }
   0x9   : > { %p4424_p5 = por %p102_p2, %p101_p0  ;;  %p4428_p6 = por %p108_p4, %p107_p3 }
   0xa   : > { %p3440_p7 = scmp.ge.s32.totalorder %s4361_s15, 1  ;;  %p140_p8 = scmp.lt.s32.totalorder %s4361_s15, 3 }
   0xc   : > { %p141_p9 = pnand %p3440_p7, %p140_p8 }
   0xe   : > { %144 = sbr.rel (%p141_p9) target bundleno = 468 (0x1d4), region = 32 }
  0x13   : > { %v4217_v0 = vld [vmem:[%s5400_s1 + $0x14] ss:$0 sps:$4 sm:$0x77]   ;;  %vm412_vm0 = vcmask 1042432   ;;  %v4218_v1 = vld [vmem:[%s5400_s1 + $0xc] sm:$0xff]   ;;  %p164_p10 = scmp.lt.s32.totalorder %s4407_s16, 1 }
  0x14   : > { %4164 = vmatprep.subr.msk.bf16.mxu1 %vm412_vm0, %v4217_v0  ;;  %4163 = vmatprep.subr.msk.bf16.mxu0 %vm412_vm0, %v4217_v0  ;;  %v414_v2 = vsel %vm412_vm0, %v4217_v0, 0  ;;  %v4223_v3 = vld [vmem:[%s5400_s1 + $0x8] ss:$0 sps:$4 sm:$0x77]   ;;  %vm265_vm1 = vsmask.f32 7424 }
  0x15   : > { %4161 = vmatpush3.bf16.msra.mxu1 %v414_v2  ;;  %3908 = vmatpush3.bf16.msra.mxu0 %v414_v2  ;;  %s165_s28 = scalar_select %p164_p10, %s4407_s16, 1  ;;  %v4226_v4 = vld [vmem:[%s5400_s1 + $0x20] ss:$0 sps:$4 sm:$0x77]   ;;  %vm375_vm2 = vcmask 179200   ;;  %v579_v9 = vsel %vm412_vm0, %v4223_v3, 0 }
  0x16   : > { %4160 = vmatprep.subr.bf16.mxu1 %v4218_v1  ;;  %3909 = vmatprep.subr.bf16.mxu0 %v4218_v1  ;;  %v790_v17 = vsel %vm412_vm0, %v4226_v4, 0  ;;  %v4232_v30 = vld [vmem:[%s5400_s1 + $0x18] sm:$0xff]   ;;  %v4231_v41 = vld [vmem:[%s5400_s1] sm:$0xff]   ;;  %v4237_v60 = vld [vmem:[%s5400_s1 + $0x2c] ss:$0 sps:$4 sm:$0x77]  }
  0x17   : > { %s4174_s6 = smul.u32 120, %s165_s28  ;;  %vm718_vm3 = vcmask 1046528   ;;  %s161_s4 = sand.u32 1, %s4353_s13  }
  0x18   : > { %s5194_s5 = smul.u32 96, %s161_s4  ;;  %s4363_s20 = smov [#allocation2]  }
  0x19   : > { %4162 = vmatpush3.bf16.msra.mxu1 %v4218_v1  ;;  %3910 = vmatpush3.bf16.msra.mxu0 %v4218_v1  ;;  %s4454_s9 = scalar_lea.vmem %s5399_s0, %s4174_s6  ;;  %s4175_s7 = smul.u32 1536, %s4407_s16 }
  0x1a   : > { %v170_v5 = vld [vmem:[%s4454_s9] sm:$0xf]  ;;  %v4458_v6 = vld [vmem:[%s4454_s9 + $0x4] sm:$0xf]  ;;  %4165 = vmatprep.subr.msk.bf16.mxu1 %vm412_vm0, %v4223_v3  ;;  %4166 = vmatprep.subr.msk.bf16.mxu0 %vm412_vm0, %v4226_v4  ;;  %v4466_v8 = vld [vmem:[%s4454_s9 + $0x8] sm:$0xff]   ;;  %s5223_s6 = scalar_lea.vmem [#allocation2], %s5194_s5 }
  0x1b   : > { %v4463_v7 = vcombine.low %v170_v5, %v4458_v6  ;;  %v274_v12 = vshll.u32 %v4466_v8, 16  ;;  %v278_v13 = vshrl.u32 %v4466_v8, 16  ;;  %v4474_v14 = vld [vmem:[%s4454_s9 + $0x30] sm:$0xff]   ;;  %v4477_v15 = vld [vmem:[%s4454_s9 + $0x38] sm:$0xff]   ;;  %v4489_v25 = vld [vmem:[%s4454_s9 + $0x40] sm:$0xff]   ;;  %s3375_s8 = sshll.u32 %s5223_s6, 4  ;;  %s5351_s17 = scalar_lea.hbm %s5402_s3, %s4175_s7  ;;  %s5354_s8 = int_to_ptr.vmem [resolvable:$true] %s3375_s8 }
  0x1c   : > { %v4480_v16 = vld [vmem:[%s4454_s9 + $0x10] sm:$0xff]   ;;  %v314_v20 = vshll.u32 %v4474_v14, 16  ;;  %v318_v21 = vshrl.u32 %v4474_v14, 16  ;;  %v322_v22 = vshll.u32 %v4477_v15, 16  ;;  %v326_v23 = vshrl.u32 %v4477_v15, 16  ;;  %v4494_v29 = vld [vmem:[%s4454_s9 + $0x18] sm:$0xff]  }
  0x1d   : > { %v267_v10 = vshrl.u32 %v4463_v7, 16  ;;  %v269_v11 = vshll.u32 %v4463_v7, 16  ;;  %v276_v19 = vrot.slane %v274_v12, 1  ;;  %v282_v24 = vshll.u32 %v4480_v16, 16  ;;  %v4505_v38 = vld [vmem:[%s4454_s9 + $0x48] sm:$0xff]   ;;  %v4509_v40 = vld [vmem:[%s4454_s9 + $0x20] sm:$0xff]  }
  0x1e   : > { %v4491_v28 = vrot.slane %v314_v20, 1  ;;  %v324_v31 = vrot.slane %v322_v22, 1  ;;  %v330_v33 = vshll.u32 %v4489_v25, 16  ;;  %v286_v34 = vshrl.u32 %v4480_v16, 16  ;;  %v4517_v46 = vld [vmem:[%s4454_s9 + $0x50] sm:$0xff]   ;;  %v4524_v51 = vld [vmem:[%s4454_s9 + $0x28] sm:$0xff]  }
  0x1f   : > { %v271_v18 = vrot.slane %v269_v11, 1  ;;  %v280_v27 = vor.u32 %v278_v13, %v276_v19  ;;  %v284_v32 = vrot.slane %v282_v24, 1  ;;  %v290_v37 = vshll.u32 %v4494_v29, 16  ;;  %v4540_v0 = vld [vmem:[%s4454_s9 + $0x58] sm:$0xff]   ;;  %v710_v5 = vld [vmem:[%s4454_s9] sm:$0xe] }
  0x20   : > { %v320_v36 = vor.u32 %v318_v21, %v4491_v28  ;;  %v334_v39 = vshrl.u32 %v4489_v25, 16  ;;  %v328_v42 = vor.u32 %v326_v23, %v324_v31  ;;  %v332_v44 = vrot.slane %v330_v33, 1  ;;  %v4549_v13 = vld [vmem:[%s4454_s9 + $0x60] ss:$0 sps:$4 sm:$0x11]   ;;  %s5359_s16 = scalar_lea.sflag [#allocation3], %s161_s4 }
  0x21   : > { %v272_v26 = vor.u32 %v271_v18, %v267_v10  ;;  %v285_v43 = vsel %vm265_vm1, %v280_v27, %v284_v32  ;;  %v288_v45 = vor.u32 %v286_v34, %v284_v32  ;;  %v292_v48 = vrot.slane %v290_v37, 1  ;;  %s4301_s19 = scalar_lea.vmem %s5354_s8, 1536  ;;  %s4305_s24 = sshll.u32 %s4363_s20, 4  ;;  %s4306_s24 = int_to_ptr.vmem [resolvable:$false] %s4305_s24 }
  0x22   : > { %v325_v47 = vsel %vm265_vm1, %v320_v36, %v324_v31  ;;  %v338_v49 = vshll.u32 %v4505_v38, 16  ;;  %v294_v50 = vshrl.u32 %v4494_v29, 16  ;;  %v333_v52 = vsel %vm265_vm1, %v328_v42, %v332_v44  ;;  %p4302_p11 = scmp.ne.s32.totalorder %s5354_s8, %s4301_s19  ;;  %s4307_s25 = scalar_lea.vmem %s4306_s24, 3072 }
  0x23   : > { %v277_v35 = vsel %vm265_vm1, %v272_v26, %v276_v19  ;;  %3923 = vmatprep.mubr.msk.bf16.mxu1 %vm375_vm2, %v325_v47  ;;  %v336_v53 = vor.u32 %v334_v39, %v332_v44  ;;  %v298_v54 = vshll.u32 %v4509_v40, 16  ;;  %v342_v55 = vshrl.u32 %v4505_v38, 16  ;;  %v4238_v26 = vld [vmem:[%s5400_s1 + $0x38] ss:$0 sps:$4 sm:$0x77]   ;;  %p4308_p0 = scmp.lt.s32.totalorder %s5354_s8, %s4306_s24  ;;  %p4309_p1 = scmp.lt.s32.totalorder %s4307_s25, %s4301_s19 }
  0x24   : > { %3911 = vmatprep.mubr.msk.bf16.mxu0 %vm375_vm2, %v277_v35  ;;  %3924 = vmatmul.mubr.msk.bf16.vlgmr.msra.gmra.mxu1 %vm375_vm2, %v333_v52  ;;  %v293_v56 = vsel %vm265_vm1, %v288_v45, %v292_v48  ;;  %v340_v57 = vrot.slane %v338_v49, 1  ;;  %v296_v58 = vor.u32 %v294_v50, %v292_v48  ;;  %v346_v59 = vshll.u32 %v4517_v46, 16  ;;  %v4598_v48 = vld [vmem:[%s5400_s1 + $0x50] ss:$0 sps:$4 sm:$0x77]   ;;  %p4303_p12 = pnand %p4302_p11, %p4424_p5 }
  0x25   : > { %3912 = vmatmul.mubr.msk.bf16.vlgmr.msra.gmra.mxu0 %vm375_vm2, %v285_v43  ;;  %3936 = vmatpush3.bf16.msra.mxu1 %v579_v9  ;;  %v300_v61 = vrot.slane %v298_v54, 1  ;;  %v302_v62 = vshrl.u32 %v4509_v40, 16  ;;  %v306_v63 = vshll.u32 %v4524_v51, 16  ;;  %v350_v4 = vshrl.u32 %v4517_v46, 16  ;;  %v4240_v43 = vld [vmem:[%s5400_s1 + $0x30] sm:$0xff]   ;;  %p4310_p2 = por %p4309_p1, %p4308_p0 }
  0x26   : > { %3964 = vmatpush3.bf16.msra.mxu0 %v790_v17  ;;  %3915 = vmatprep.mubr.msk.bf16.mxu0 %vm375_vm2, %v293_v56  ;;  %v341_v1 = vsel %vm265_vm1, %v336_v53, %v340_v57  ;;  %v344_v2 = vor.u32 %v342_v55, %v340_v57  ;;  %v348_v3 = vrot.slane %v346_v59, 1  ;;  %v354_v12 = vshll.u32 %v4540_v0, 16  ;;  %v4605_v49 = vld [vmem:[%s5400_s1 + $0x44] ss:$0 sps:$4 sm:$0x77]   ;;  %p4304_p13 = pneg %p4303_p12 }
  0x27   : > { %3965 = vmatprep.subr.bf16.mxu0 %v4232_v30  ;;  %3937 = vmatprep.subr.bf16.mxu1 %v4231_v41  ;;  %v301_v9 = vsel %vm265_vm1, %v296_v58, %v300_v61  ;;  %v304_v10 = vor.u32 %v302_v62, %v300_v61  ;;  %v308_v11 = vrot.slane %v306_v63, 1  ;;  %v310_v19 = vshrl.u32 %v4524_v51, 16 }
  0x28   : > { %3927 = vmatprep.mubr.msk.bf16.mxu1 %vm375_vm2, %v341_v1  ;;  %v349_v17 = vsel %vm265_vm1, %v344_v2, %v348_v3  ;;  %v352_v18 = vor.u32 %v350_v4, %v348_v3  ;;  %v358_v20 = vshrl.u32 %v4540_v0, 16  ;;  %v356_v22 = vrot.slane %v354_v12, 1  ;;  %v4654_v4 = vld [vmem:[%s4454_s9 + $0x18] sm:$0xff]   ;;  %p4311_p3 = pnand %p4310_p2, %p4304_p13 }
  0x29   : > { %3938 = vmatpush3.bf16.msra.mxu1 %v4231_v41  ;;  %v309_v21 = vsel %vm265_vm1, %v304_v10, %v308_v11  ;;  %v362_v23 = vshll.u32 %v4549_v13, 16  ;;  %v3489_v24 = vcombine.low %v710_v5, %v4458_v6  ;;  %v720_v6 = vrot.slane %v4466_v8, 1 }
  0x2a   : > { %3966 = vmatpush3.bf16.msra.mxu0 %v4232_v30  ;;  %4167 = vmatprep.subr.msk.bf16.mxu1 %vm412_vm0, %v4237_v60  ;;  %v357_v27 = vsel %vm265_vm1, %v352_v18, %v356_v22  ;;  %v312_v30 = vor.u32 %v310_v19, %v308_v11  ;;  %v360_v32 = vor.u32 %v358_v20, %v356_v22  ;;  %v722_v37 = vrot.slane %v4480_v16, 1  ;;  %v4241_v18 = vld [vmem:[%s4454_s9 + $0x8] sm:$0xff]  }
  0x2b   : > { %4168 = vmatprep.subr.msk.bf16.mxu0 %vm412_vm0, %v4238_v26  ;;  %v719_v31 = vrot.slane %v3489_v24, 1  ;;  %v364_v33 = vrot.slane %v362_v23, 1  ;;  %v724_v39 = vrot.slane %v4494_v29, 1  ;;  %v1079_v44 = vsel %vm412_vm0, %v4237_v60, 0  ;;  %v4674_v20 = vld [vmem:[%s4454_s9 + $0x28] sm:$0xff]  }
  0x2c   : > { %3928 = vmatmul.mubr.msk.bf16.gmra.mxu1 %vm375_vm2, %v349_v17  ;;  %v317_v34 = vsel %vm265_vm1, %v312_v30, %v4491_v28  ;;  %v723_v41 = vsel %vm718_vm3, %v720_v6, %v722_v37  ;;  %v1472_v28 = vsel %vm412_vm0, %v4238_v26, 0  ;;  %v726_v45 = vrot.slane %v4509_v40, 1  ;;  %v4245_v26 = vld [vmem:[%s4454_s9 + $0x10] sm:$0xff]  }
  0x2d   : > { %3916 = vmatmul.mubr.msk.bf16.gmra.mxu0 %vm375_vm2, %v301_v9  ;;  %3931 = vmatprep.mubr.msk.bf16.mxu1 %vm375_vm2, %v357_v27  ;;  %v721_v35 = vsel %vm718_vm3, %v719_v31, %v720_v6  ;;  %v365_v36 = vsel %vm265_vm1, %v360_v32, %v364_v33  ;;  %v725_v42 = vsel %vm718_vm3, %v722_v37, %v724_v39  ;;  %v728_v47 = vrot.slane %v4524_v51, 1  ;;  %v4661_v9 = vld [vmem:[%s4454_s9 + $0x20] sm:$0xff]   ;;  %v4248_v32 = vld [vmem:[%s4454_s9 + $0x18] sm:$0xff]  }
  0x2e   : > { %3919 = vmatprep.mubr.msk.bf16.mxu0 %vm375_vm2, %v309_v21  ;;  %v732_v52 = vrot.slane %v4477_v15, 1  ;;  %v734_v55 = vrot.slane %v4489_v25, 1  ;;  %v736_v56 = vrot.slane %v4505_v38, 1  ;;  %v738_v60 = vrot.slane %v4517_v46, 1  ;;  %v4678_v21 = vld [vmem:[%s4454_s9 + $0x30] sm:$0xff]  }
  0x2f   : > { %v729_v50 = vsel %vm718_vm3, %v726_v45, %v728_v47  ;;  %v1342_v10 = vshll.u32 %v4654_v4, 16  ;;  %v1346_v17 = vshrl.u32 %v4654_v4, 16  ;;  %v1358_v24 = vshll.u32 %v4674_v20, 16 }
  0x30   : > { %v735_v57 = vsel %vm718_vm3, %v732_v52, %v734_v55  ;;  %v737_v58 = vsel %vm718_vm3, %v734_v55, %v736_v56  ;;  %v739_v62 = vsel %vm718_vm3, %v736_v56, %v738_v60  ;;  %v1354_v30 = vshrl.u32 %v4661_v9, 16 }
  0x31   : > { %v1344_v19 = vrot.slane %v1342_v10, 1  ;;  %v1366_v31 = vshll.u32 %v4678_v21, 16  ;;  %v1995_v6 = vsel %vm412_vm0, %v4598_v48, 0  ;;  %v1362_v33 = vshrl.u32 %v4674_v20, 16  ;;  %v4758_v10 = vld [vmem:[%s4454_s9 + $0x60] sm:$0xff]  }
  0x32   : > { %v1360_v37 = vrot.slane %v1358_v24, 1  ;;  %v4772_v24 = vld [vmem:[%s4454_s9 + $0x68] ss:$0 sps:$4 sm:$0x11]  }
  0x33   : > { %v1348_v22 = vor.u32 %v1346_v17, %v1344_v19  ;;  %v4259_v17 = vld [vmem:[%s4454_s9 + $0x40] sm:$0xff]  }
  0x34   : > { %3932 = vmatmul.mubr.msk.bf16.gmra.mxu1 %vm375_vm2, %v365_v36  ;;  %v4699_v36 = vld [vmem:[%s4454_s9 + $0x38] sm:$0xff]  }
  0x35   : > { %3920 = vmatmul.mubr.msk.bf16.gmra.mxu0 %vm375_vm2, %v317_v34  ;;  %3939 = vmatprep.mubr.msk.bf16.mxu1 %vm375_vm2, %v4463_v7  ;;  %v4239_v7 = vld [vmem:[%s5400_s1 + $0x24] sm:$0xff]  }
  0x36   : > { %3967 = vmatprep.mubr.msk.bf16.mxu0 %vm375_vm2, %v721_v35  ;;  %v4261_v34 = vld [vmem:[%s5400_s1 + $0x48] sm:$0xff]   ;;  %v1706_v35 = vsel %vm412_vm0, %v4605_v49, 0 }
  0x3c   : > { %3940 = vmatmul.mubr.msk.bf16.vlgmr.msra.gmra.mxu1 %vm375_vm2, %v4466_v8  ;;  %v727_v8 = vsel %vm718_vm3, %v724_v39, %v726_v45  ;;  %v4258_v39 = vld [vmem:[%s5400_s1 + $0x3c] sm:$0xff]   ;;  %v1374_v45 = vshll.u32 %v4699_v36, 16 }
  0x3d   : > { %3968 = vmatmul.mubr.msk.bf16.vlgmr.msra.gmra.mxu0 %vm375_vm2, %v723_v41  ;;  %3992 = vmatpush3.bf16.msra.mxu1 %v1079_v44  ;;  %v4713_v44 = vld [vmem:[%s5400_s1 + $0x68] ss:$0 sps:$4 sm:$0x77]  }
  0x3e   : > { %4020 = vmatpush3.bf16.msra.mxu0 %v1472_v28  ;;  %3971 = vmatprep.mubr.msk.bf16.mxu0 %vm375_vm2, %v725_v42  ;;  %v1368_v28 = vrot.slane %v1366_v31, 1  ;;  %v1364_v42 = vor.u32 %v1362_v33, %v1360_v37  ;;  %v1418_v31 = vshrl.u32 %v4758_v10, 16 }
  0x3f   : > { %4021 = vmatprep.subr.bf16.mxu0 %v4240_v43  ;;  %3943 = vmatprep.mubr.msk.bf16.mxu1 %vm375_vm2, %v4480_v16  ;;  %v730_v16 = vrot.slane %v4474_v14, 1 }
  0x40   : > { %3993 = vmatprep.subr.bf16.mxu1 %v4239_v7 }
  0x41   : > { %3994 = vmatpush3.bf16.msra.mxu1 %v4239_v7  ;;  %v731_v53 = vsel %vm718_vm3, %v728_v47, %v730_v16  ;;  %v733_v54 = vsel %vm718_vm3, %v730_v16, %v732_v52  ;;  %v4720_v7 = vld [vmem:[%s5400_s1 + $0x5c] ss:$0 sps:$4 sm:$0x77]   ;;  %v4252_v52 = vld [vmem:[%s4454_s9 + $0x28] sm:$0xff]  }
  0x42   : > { %4022 = vmatpush3.bf16.msra.mxu0 %v4240_v43  ;;  %4169 = vmatprep.subr.msk.bf16.mxu1 %vm412_vm0, %v4605_v49  ;;  %v4708_v43 = vld [vmem:[%s4454_s9 + $0x40] sm:$0xff]  }
  0x43   : > { %4170 = vmatprep.subr.msk.bf16.mxu0 %vm412_vm0, %v4598_v48  ;;  %v1370_v48 = vshrl.u32 %v4678_v21, 16  ;;  %v4250_v49 = vld [vmem:[%s4454_s9 + $0x20] sm:$0xff]   ;;  %v1382_v16 = vshll.u32 %v4708_v43, 16 }
  0x44   : > { %3944 = vmatmul.mubr.msk.bf16.gmra.mxu1 %vm375_vm2, %v4494_v29  ;;  %v1234_v29 = vld [vmem:[%s4454_s9 + $0x8] sm:$0xf] }
  0x45   : > { %3972 = vmatmul.mubr.msk.bf16.gmra.mxu0 %vm375_vm2, %v727_v8  ;;  %3947 = vmatprep.mubr.msk.bf16.mxu1 %vm375_vm2, %v4509_v40  ;;  %v4633_v40 = vld [vmem:[%s4454_s9 + $0xc] sm:$0xf]  ;;  %v1369_v8 = vsel %vm265_vm1, %v1364_v42, %v1368_v28  ;;  %v1372_v55 = vor.u32 %v1370_v48, %v1368_v28  ;;  %v1638_v48 = vrot.slane %v4654_v4, 1  ;;  %v2388_v4 = vsel %vm412_vm0, %v4720_v7, 0 }
  0x46   : > { %3975 = vmatprep.mubr.msk.bf16.mxu0 %vm375_vm2, %v729_v50  ;;  %v3536_v59 = vcombine.low %v1234_v29, %v4633_v40  ;;  %v1378_v50 = vshrl.u32 %v4699_v36, 16  ;;  %v1384_v29 = vrot.slane %v1382_v16, 1  ;;  %v4282_v16 = vld [vmem:[%s5400_s1 + $0x60] sm:$0xff]  }
  0x48   : > { %v1329_v61 = vshll.u32 %v3536_v59, 16  ;;  %v1327_v2 = vshrl.u32 %v3536_v59, 16 }
  0x4a   : > { %v1331_v3 = vrot.slane %v1329_v61, 1 }
  0x4c   : > { %3948 = vmatmul.mubr.msk.bf16.gmra.mxu1 %vm375_vm2, %v4524_v51  ;;  %v4642_v51 = vld [vmem:[%s4454_s9 + $0x10] sm:$0xff]  }
  0x4d   : > { %3976 = vmatmul.mubr.msk.bf16.gmra.mxu0 %vm375_vm2, %v731_v53  ;;  %3951 = vmatprep.mubr.msk.bf16.mxu1 %vm375_vm2, %v4474_v14  ;;  %v740_v14 = vrot.slane %v4540_v0, 1  ;;  %v1334_v63 = vshll.u32 %v4642_v51, 16  ;;  %v1338_v12 = vshrl.u32 %v4642_v51, 16  ;;  %v1376_v53 = vrot.slane %v1374_v45, 1  ;;  %v4271_v45 = vld [vmem:[%s4454_s9 + $0x10] sm:$0xff]  }
  0x4e   : > { %3979 = vmatprep.mubr.msk.bf16.mxu0 %vm375_vm2, %v733_v54  ;;  %v4733_v54 = vld [vmem:[%s4454_s9 + $0x48] sm:$0xff]   ;;  %v1636_v28 = vrot.slane %v4642_v51, 1  ;;  %v4275_v51 = vld [vmem:[%s4454_s9 + $0x20] sm:$0xff]  }
  0x4f   : > { %v741_v1 = vsel %vm718_vm3, %v738_v60, %v740_v14  ;;  %v1336_v5 = vrot.slane %v1334_v63, 1  ;;  %v1380_v56 = vor.u32 %v1378_v50, %v1376_v53  ;;  %v1377_v59 = vsel %vm265_vm1, %v1372_v55, %v1376_v53 }
  0x50   : > { %v1386_v60 = vshrl.u32 %v4708_v43, 16  ;;  %v2622_v50 = vsel %vm412_vm0, %v4713_v44, 0  ;;  %v1644_v55 = vrot.slane %v4678_v21, 1  ;;  %v4278_v21 = vld [vmem:[%s4454_s9 + $0x38] sm:$0xff]  }
  0x51   : > { %v1385_v61 = vsel %vm265_vm1, %v1380_v56, %v1384_v29  ;;  %v4277_v56 = vld [vmem:[%s4454_s9 + $0x30] sm:$0xff]  }
  0x54   : > { %3952 = vmatmul.mubr.msk.bf16.gmra.mxu1 %vm375_vm2, %v4477_v15  ;;  %v742_v15 = vrot.slane %v4549_v13, 1 }
  0x55   : > { %3980 = vmatmul.mubr.msk.bf16.gmra.mxu0 %vm375_vm2, %v735_v57  ;;  %3955 = vmatprep.mubr.msk.bf16.mxu1 %vm375_vm2, %v4489_v25  ;;  %v1332_v25 = vor.u32 %v1331_v3, %v1327_v2  ;;  %v4740_v57 = vld [vmem:[%s4454_s9 + $0x50] sm:$0xff]   ;;  %v4753_v3 = vld [vmem:[%s4454_s9 + $0x58] sm:$0xff]  }
  0x56   : > { %3983 = vmatprep.mubr.msk.bf16.mxu0 %vm375_vm2, %v737_v58  ;;  %v743_v11 = vsel %vm718_vm3, %v740_v14, %v742_v15  ;;  %v1390_v58 = vshll.u32 %v4733_v54, 16  ;;  %v4254_v14 = vld [vmem:[%s4454_s9 + $0x30] sm:$0xff]   ;;  %v1398_v63 = vshll.u32 %v4740_v57, 16  ;;  %v1388_v15 = vor.u32 %v1386_v60, %v1384_v29  ;;  %v4279_v60 = vld [vmem:[%s4454_s9 + $0x40] sm:$0xff]  }
  0x57   : > { %v1337_v13 = vsel %vm265_vm1, %v1332_v25, %v1336_v5 }
  0x58   : > { %v1392_v2 = vrot.slane %v1390_v58, 1 }
  0x5c   : > { %3956 = vmatmul.mubr.msk.bf16.gmra.mxu1 %vm375_vm2, %v4505_v38  ;;  %v1350_v38 = vshll.u32 %v4661_v9, 16 }
  0x5d   : > { %3984 = vmatmul.mubr.msk.bf16.gmra.mxu0 %vm375_vm2, %v739_v62  ;;  %3959 = vmatprep.mubr.msk.bf16.mxu1 %vm375_vm2, %v4517_v46  ;;  %v1340_v46 = vor.u32 %v1338_v12, %v1336_v5  ;;  %v1394_v62 = vshrl.u32 %v4733_v54, 16  ;;  %v1400_v5 = vrot.slane %v1398_v63, 1  ;;  %v1393_v12 = vsel %vm265_vm1, %v1388_v15, %v1392_v2  ;;  %v4283_v63 = vld [vmem:[%s4454_s9 + $0x50] sm:$0xff]  }
  0x5e   : > { %3987 = vmatprep.mubr.msk.bf16.mxu0 %vm375_vm2, %v741_v1  ;;  %v1352_v23 = vrot.slane %v1350_v38, 1  ;;  %v4256_v1 = vld [vmem:[%s4454_s9 + $0x38] sm:$0xff]  }
  0x5f   : > { %v1345_v27 = vsel %vm265_vm1, %v1340_v46, %v1344_v19  ;;  %v1396_v25 = vor.u32 %v1394_v62, %v1392_v2  ;;  %v1414_v19 = vshll.u32 %v4758_v10, 16  ;;  %v4262_v46 = vld [vmem:[%s4454_s9 + $0x48] sm:$0xff]   ;;  %v2151_v2 = vld [vmem:[%s4454_s9 + $0x14] sm:$0xf] }
  0x60   : > { %v1356_v41 = vor.u32 %v1354_v30, %v1352_v23  ;;  %v4281_v62 = vld [vmem:[%s4454_s9 + $0x48] sm:$0xff]  }
  0x61   : > { %v1401_v38 = vsel %vm265_vm1, %v1396_v25, %v1400_v5 }
  0x62   : > { %v1361_v47 = vsel %vm265_vm1, %v1356_v41, %v1360_v37 }
  0x64   : > { %3960 = vmatmul.mubr.msk.bf16.gmra.mxu1 %vm375_vm2, %v4540_v0  ;;  %v1353_v0 = vsel %vm265_vm1, %v1348_v22, %v1352_v23 }
  0x65   : > { %3988 = vmatmul.mubr.msk.bf16.gmra.mxu0 %vm375_vm2, %v743_v11  ;;  %3995 = vmatprep.mubr.msk.bf16.mxu1 %vm375_vm2, %v4241_v18  ;;  %v1406_v11 = vshll.u32 %v4753_v3, 16  ;;  %v1410_v18 = vshrl.u32 %v4753_v3, 16 }
  0x66   : > { %4023 = vmatprep.mubr.msk.bf16.mxu0 %vm375_vm2, %v1337_v13  ;;  %v1402_v13 = vshrl.u32 %v4740_v57, 16 }
  0x67   : > { %v1408_v22 = vrot.slane %v1406_v11, 1  ;;  %v4284_v11 = vld [vmem:[%s4454_s9 + $0x58] sm:$0xff]  }
  0x68   : > { %v1404_v23 = vor.u32 %v1402_v13, %v1400_v5  ;;  %v4288_v13 = vld [vmem:[%s4454_s9 + $0x18] sm:$0xff]  }
  0x6a   : > { %v1409_v30 = vsel %vm265_vm1, %v1404_v23, %v1408_v22 }
  0x6c   : > { %3996 = vmatmul.mubr.msk.bf16.vlgmr.msra.gmra.mxu1 %vm375_vm2, %v4245_v26  ;;  %v1412_v26 = vor.u32 %v1410_v18, %v1408_v22 }
  0x6d   : > { %4024 = vmatmul.mubr.msk.bf16.vlgmr.msra.gmra.mxu0 %vm375_vm2, %v1345_v27  ;;  %4048 = vmatpush3.bf16.msra.mxu1 %v1706_v35  ;;  %v1416_v27 = vrot.slane %v1414_v19, 1 }
  0x6e   : > { %4076 = vmatpush3.bf16.msra.mxu0 %v1995_v6  ;;  %4027 = vmatprep.mubr.msk.bf16.mxu0 %vm375_vm2, %v1353_v0  ;;  %v1422_v6 = vshll.u32 %v4772_v24, 16  ;;  %v4264_v0 = vld [vmem:[%s4454_s9 + $0x50] sm:$0xff]  }
  0x6f   : > { %4077 = vmatprep.subr.bf16.mxu0 %v4261_v34  ;;  %3999 = vmatprep.mubr.msk.bf16.mxu1 %vm375_vm2, %v4248_v32  ;;  %v1627_v32 = vld [vmem:[%s4454_s9 + $0x8] sm:$0xe]  ;;  %v1417_v33 = vsel %vm265_vm1, %v1412_v26, %v1416_v27  ;;  %v1420_v37 = vor.u32 %v1418_v31, %v1416_v27  ;;  %v2552_v26 = vrot.slane %v4288_v13, 1  ;;  %v4290_v27 = vld [vmem:[%s4454_s9 + $0x20] sm:$0xff]  }
  0x70   : > { %4049 = vmatprep.subr.bf16.mxu1 %v4258_v39  ;;  %v3566_v35 = vcombine.low %v1627_v32, %v4633_v40  ;;  %v4286_v31 = vld [vmem:[%s4454_s9 + $0x68] sm:$0xff]  }
  0x71   : > { %4050 = vmatpush3.bf16.msra.mxu1 %v4258_v39  ;;  %v1424_v39 = vrot.slane %v1422_v6, 1 }
  0x72   : > { %4078 = vmatpush3.bf16.msra.mxu0 %v4261_v34  ;;  %4171 = vmatprep.subr.msk.bf16.mxu1 %vm412_vm0, %v4720_v7  ;;  %v4266_v34 = vld [vmem:[%s4454_s9 + $0x58] sm:$0xff]   ;;  %v1635_v41 = vrot.slane %v3566_v35, 1  ;;  %v4276_v7 = vld [vmem:[%s4454_s9 + $0x28] sm:$0xff]  }
  0x73   : > { %4172 = vmatprep.subr.msk.bf16.mxu0 %vm412_vm0, %v4713_v44  ;;  %v1425_v42 = vsel %vm265_vm1, %v1420_v37, %v1424_v39  ;;  %v1642_v44 = vrot.slane %v4674_v20, 1  ;;  %v1646_v20 = vrot.slane %v4699_v36, 1  ;;  %v1650_v36 = vrot.slane %v4733_v54, 1 }
  0x74   : > { %4000 = vmatmul.mubr.msk.bf16.gmra.mxu1 %vm375_vm2, %v4250_v49  ;;  %v1637_v40 = vsel %vm718_vm3, %v1635_v41, %v1636_v28  ;;  %v4273_v49 = vld [vmem:[%s4454_s9 + $0x18] sm:$0xff]   ;;  %v1654_v54 = vrot.slane %v4753_v3, 1  ;;  %v2250_v3 = vshll.u32 %v4288_v13, 16  ;;  %v2254_v37 = vshrl.u32 %v4288_v13, 16 }
  0x75   : > { %4028 = vmatmul.mubr.msk.bf16.gmra.mxu0 %vm375_vm2, %v1361_v47  ;;  %4003 = vmatprep.mubr.msk.bf16.mxu1 %vm375_vm2, %v4252_v52  ;;  %v4268_v47 = vld [vmem:[%s4454_s9 + $0x60] sm:$0xff]   ;;  %v1639_v52 = vsel %vm718_vm3, %v1636_v28, %v1638_v48  ;;  %v1645_v58 = vsel %vm718_vm3, %v1642_v44, %v1644_v55  ;;  %v2262_v41 = vshrl.u32 %v4290_v27, 16 }
  0x76   : > { %4031 = vmatprep.mubr.msk.bf16.mxu0 %vm375_vm2, %v1369_v8  ;;  %v1640_v8 = vrot.slane %v4661_v9, 1  ;;  %v4280_v9 = vld [vmem:[%s5400_s1 + $0x54] sm:$0xff]   ;;  %v2252_v32 = vrot.slane %v2250_v3, 1 }
  0x78   : > { %v1641_v53 = vsel %vm718_vm3, %v1638_v48, %v1640_v8  ;;  %v1643_v29 = vsel %vm718_vm3, %v1640_v8, %v1642_v44  ;;  %v4293_v8 = vld [vmem:[%s4454_s9 + $0x38] sm:$0xff]  }
  0x79   : > { %v2282_v44 = vshll.u32 %v4293_v8, 16 }
  0x7c   : > { %4004 = vmatmul.mubr.msk.bf16.gmra.mxu1 %vm375_vm2, %v4254_v14  ;;  %v1647_v14 = vsel %vm718_vm3, %v1644_v55, %v1646_v20 }
  0x7d   : > { %4032 = vmatmul.mubr.msk.bf16.gmra.mxu0 %vm375_vm2, %v1377_v59  ;;  %4007 = vmatprep.mubr.msk.bf16.mxu1 %vm375_vm2, %v4256_v1  ;;  %v1648_v59 = vrot.slane %v4708_v43, 1  ;;  %v1652_v43 = vrot.slane %v4740_v57, 1  ;;  %v2150_v1 = vld [vmem:[%s4454_s9 + $0x10] sm:$0xf] }
  0x7e   : > { %4035 = vmatprep.mubr.msk.bf16.mxu0 %vm375_vm2, %v1385_v61  ;;  %v3613_v5 = vcombine.low %v2150_v1, %v2151_v2  ;;  %v2543_v57 = vld [vmem:[%s4454_s9 + $0x10] sm:$0xe] }
  0x7f   : > { %v1649_v61 = vsel %vm718_vm3, %v1646_v20, %v1648_v59  ;;  %v1651_v15 = vsel %vm718_vm3, %v1648_v59, %v1650_v36  ;;  %v1653_v25 = vsel %vm718_vm3, %v1650_v36, %v1652_v43  ;;  %v3643_v18 = vcombine.low %v2543_v57, %v2151_v2  ;;  %v4295_v59 = vld [vmem:[%s4454_s9 + $0x48] sm:$0xff]  }
  0x80   : > { %v1655_v19 = vsel %vm718_vm3, %v1652_v43, %v1654_v54  ;;  %v2243_v22 = vshrl.u32 %v3613_v5, 16  ;;  %v2298_v1 = vshll.u32 %v4295_v59, 16 }
  0x84   : > { %4008 = vmatmul.mubr.msk.bf16.gmra.mxu1 %vm375_vm2, %v4259_v17  ;;  %v2245_v17 = vshll.u32 %v3613_v5, 16  ;;  %v4296_v5 = vld [vmem:[%s4454_s9 + $0x50] sm:$0xff]  }
  0x85   : > { %4036 = vmatmul.mubr.msk.bf16.gmra.mxu0 %vm375_vm2, %v1393_v12  ;;  %4011 = vmatprep.mubr.msk.bf16.mxu1 %vm375_vm2, %v4262_v46  ;;  %v1656_v12 = vrot.slane %v4758_v10, 1  ;;  %v2551_v10 = vrot.slane %v3643_v18, 1  ;;  %v2566_v3 = vrot.slane %v4296_v5, 1 }
  0x86   : > { %4039 = vmatprep.mubr.msk.bf16.mxu0 %vm375_vm2, %v1401_v38  ;;  %v4285_v38 = vld [vmem:[%s4454_s9 + $0x60] sm:$0xff]   ;;  %v2247_v23 = vrot.slane %v2245_v17, 1 }
  0x87   : > { %v1657_v46 = vsel %vm718_vm3, %v1654_v54, %v1656_v12 }
  0x88   : > { %v2248_v6 = vor.u32 %v2247_v23, %v2243_v22  ;;  %v2310_v22 = vshrl.u32 %v4296_v5, 16 }
  0x8a   : > { %v2253_v39 = vsel %vm265_vm1, %v2248_v6, %v2252_v32 }
  0x8c   : > { %4012 = vmatmul.mubr.msk.bf16.gmra.mxu1 %vm375_vm2, %v4264_v0  ;;  %v4291_v0 = vld [vmem:[%s4454_s9 + $0x28] sm:$0xff]  }
  0x8d   : > { %4040 = vmatmul.mubr.msk.bf16.gmra.mxu0 %vm375_vm2, %v1409_v30  ;;  %4015 = vmatprep.mubr.msk.bf16.mxu1 %vm375_vm2, %v4266_v34  ;;  %v1658_v30 = vrot.slane %v4772_v24, 1  ;;  %v2258_v34 = vshll.u32 %v4290_v27, 16  ;;  %v2266_v28 = vshll.u32 %v4291_v0, 16  ;;  %v2554_v24 = vrot.slane %v4290_v27, 1  ;;  %v4298_v27 = vld [vmem:[%s4454_s9 + $0x60] sm:$0xff]  }
  0x8e   : > { %4043 = vmatprep.mubr.msk.bf16.mxu0 %vm375_vm2, %v1417_v33  ;;  %v2553_v33 = vsel %vm718_vm3, %v2551_v10, %v2552_v26 }
  0x8f   : > { %v1659_v35 = vsel %vm718_vm3, %v1656_v12, %v1658_v30  ;;  %v4297_v12 = vld [vmem:[%s4454_s9 + $0x58] sm:$0xff]  }
  0x90   : > { %v2314_v23 = vshll.u32 %v4297_v12, 16 }
  0x92   : > { %v2316_v6 = vrot.slane %v2314_v23, 1 }
  0x94   : > { %4016 = vmatmul.mubr.msk.bf16.gmra.mxu1 %vm375_vm2, %v4268_v47  ;;  %v4292_v47 = vld [vmem:[%s4454_s9 + $0x30] sm:$0xff]  }
  0x95   : > { %4044 = vmatmul.mubr.msk.bf16.gmra.mxu0 %vm375_vm2, %v1425_v42  ;;  %4051 = vmatprep.mubr.msk.bf16.mxu1 %vm375_vm2, %v1637_v40  ;;  %v2260_v42 = vrot.slane %v2258_v34, 1  ;;  %v2256_v40 = vor.u32 %v2254_v37, %v2252_v32  ;;  %v4299_v32 = vld [vmem:[%s4454_s9 + $0x68] sm:$0xff]   ;;  %v2322_v34 = vshll.u32 %v4298_v27, 16  ;;  %v2318_v37 = vshrl.u32 %v4297_v12, 16 }
  0x96   : > { %4079 = vmatprep.mubr.msk.bf16.mxu0 %vm375_vm2, %v4271_v45  ;;  %v2556_v45 = vrot.slane %v4291_v0, 1 }
  0x97   : > { %v2264_v48 = vor.u32 %v2262_v41, %v2260_v42 }
  0x9c   : > { %4052 = vmatmul.mubr.msk.bf16.vlgmr.msra.gmra.mxu1 %vm375_vm2, %v1639_v52  ;;  %v2261_v52 = vsel %vm265_vm1, %v2256_v40, %v2260_v42  ;;  %v2570_v42 = vrot.slane %v4298_v27, 1  ;;  %v2324_v40 = vrot.slane %v2322_v34, 1 }
  0x9d   : > { %4080 = vmatmul.mubr.msk.bf16.vlgmr.msra.gmra.mxu0 %vm375_vm2, %v4273_v49  ;;  %4104 = vmatpush3.bf16.msra.mxu1 %v2388_v4  ;;  %v2268_v49 = vrot.slane %v2266_v28, 1  ;;  %v2270_v4 = vshrl.u32 %v4291_v0, 16  ;;  %v2326_v28 = vshrl.u32 %v4298_v27, 16 }
  0x9e   : > { %4132 = vmatpush3.bf16.msra.mxu0 %v2622_v50  ;;  %4083 = vmatprep.mubr.msk.bf16.mxu0 %vm375_vm2, %v4275_v51  ;;  %v2555_v51 = vsel %vm718_vm3, %v2552_v26, %v2554_v24  ;;  %v2557_v50 = vsel %vm718_vm3, %v2554_v24, %v2556_v45  ;;  %v2568_v26 = vrot.slane %v4297_v12, 1  ;;  %v2330_v24 = vshll.u32 %v4299_v32, 16 }
  0x9f   : > { %4133 = vmatprep.subr.bf16.mxu0 %v4282_v16  ;;  %4055 = vmatprep.mubr.msk.bf16.mxu1 %vm375_vm2, %v1641_v53  ;;  %v2269_v53 = vsel %vm265_vm1, %v2264_v48, %v2268_v49  ;;  %v2572_v48 = vrot.slane %v4299_v32, 1 }
  0xa0   : > { %4105 = vmatprep.subr.bf16.mxu1 %v4280_v9 }
  0xa1   : > { %4106 = vmatpush3.bf16.msra.mxu1 %v4280_v9  ;;  %v2278_v9 = vshrl.u32 %v4292_v47, 16 }
  0xa2   : > { %4134 = vmatpush3.bf16.msra.mxu0 %v4282_v16  ;;  %v2274_v16 = vshll.u32 %v4292_v47, 16 }
  0xa4   : > { %4056 = vmatmul.mubr.msk.bf16.gmra.mxu1 %vm375_vm2, %v1643_v29  ;;  %v2276_v55 = vrot.slane %v2274_v16, 1  ;;  %v4294_v29 = vld [vmem:[%s4454_s9 + $0x40] sm:$0xff]   ;;  %v2328_v16 = vor.u32 %v2326_v28, %v2324_v40 }
  0xa5   : > { %4084 = vmatmul.mubr.msk.bf16.gmra.mxu0 %vm375_vm2, %v4276_v7  ;;  %4059 = vmatprep.mubr.msk.bf16.mxu1 %vm375_vm2, %v1645_v58  ;;  %v2558_v7 = vrot.slane %v4292_v47, 1  ;;  %v2272_v58 = vor.u32 %v2270_v4, %v2268_v49  ;;  %v2562_v2 = vrot.slane %v4294_v29, 1  ;;  %v2320_v49 = vor.u32 %v2318_v37, %v2316_v6 }
  0xa6   : > { %4087 = vmatprep.mubr.msk.bf16.mxu0 %vm375_vm2, %v4277_v56  ;;  %v2560_v56 = vrot.slane %v4293_v8, 1  ;;  %v2280_v20 = vor.u32 %v2278_v9, %v2276_v55  ;;  %v2571_v4 = vsel %vm718_vm3, %v2568_v26, %v2570_v42 }
  0xa7   : > { %v2277_v36 = vsel %vm265_vm1, %v2272_v58, %v2276_v55  ;;  %v2334_v55 = vshrl.u32 %v4299_v32, 16 }
  0xa8   : > { %v2563_v13 = vsel %vm718_vm3, %v2560_v56, %v2562_v2 }
  0xac   : > { %4060 = vmatmul.mubr.msk.bf16.gmra.mxu1 %vm375_vm2, %v1647_v14  ;;  %v2561_v14 = vsel %vm718_vm3, %v2558_v7, %v2560_v56 }
  0xad   : > { %4088 = vmatmul.mubr.msk.bf16.gmra.mxu0 %vm375_vm2, %v4278_v21  ;;  %4063 = vmatprep.mubr.msk.bf16.mxu1 %vm375_vm2, %v1649_v61  ;;  %v2284_v21 = vrot.slane %v2282_v44, 1  ;;  %v2290_v61 = vshll.u32 %v4294_v29, 16  ;;  %v2573_v44 = vsel %vm718_vm3, %v2570_v42, %v2572_v48 }
  0xae   : > { %4091 = vmatprep.mubr.msk.bf16.mxu0 %vm375_vm2, %v4279_v60  ;;  %v2559_v60 = vsel %vm718_vm3, %v2556_v45, %v2558_v7  ;;  %v2325_v7 = vsel %vm265_vm1, %v2320_v49, %v2324_v40 }
  0xaf   : > { %v2285_v43 = vsel %vm265_vm1, %v2280_v20, %v2284_v21 }
  0xb4   : > { %4064 = vmatmul.mubr.msk.bf16.gmra.mxu1 %vm375_vm2, %v1651_v15  ;;  %v2292_v15 = vrot.slane %v2290_v61, 1 }
  0xb5   : > { %4092 = vmatmul.mubr.msk.bf16.gmra.mxu0 %vm375_vm2, %v4281_v62  ;;  %4067 = vmatprep.mubr.msk.bf16.mxu1 %vm375_vm2, %v1653_v25  ;;  %v2286_v62 = vshrl.u32 %v4293_v8, 16  ;;  %v2564_v25 = vrot.slane %v4295_v59, 1  ;;  %v4300_v8 = vld [vmem:[%s4454_s9 + $0x70] ss:$0 sps:$4 sm:$0x11]  }
  0xb6   : > { %4095 = vmatprep.mubr.msk.bf16.mxu0 %vm375_vm2, %v4283_v63  ;;  %v2294_v63 = vshrl.u32 %v4294_v29, 16  ;;  %v2338_v56 = vshll.u32 %v4300_v8, 16 }
  0xb7   : > { %v2288_v54 = vor.u32 %v2286_v62, %v2284_v21  ;;  %v2565_v17 = vsel %vm718_vm3, %v2562_v2, %v2564_v25  ;;  %v2567_v0 = vsel %vm718_vm3, %v2564_v25, %v2566_v3  ;;  %v2574_v21 = vrot.slane %v4300_v8, 1 }
  0xb8   : > { %v2296_v57 = vor.u32 %v2294_v63, %v2292_v15  ;;  %v2340_v61 = vrot.slane %v2338_v56, 1 }
  0xb9   : > { %v2293_v18 = vsel %vm265_vm1, %v2288_v54, %v2292_v15 }
  0xbc   : > { %4068 = vmatmul.mubr.msk.bf16.gmra.mxu1 %vm375_vm2, %v1655_v19  ;;  %v2302_v19 = vshrl.u32 %v4295_v59, 16 }
  0xbd   : > { %4096 = vmatmul.mubr.msk.bf16.gmra.mxu0 %vm375_vm2, %v4284_v11  ;;  %4071 = vmatprep.mubr.msk.bf16.mxu1 %vm375_vm2, %v1657_v46  ;;  %v2300_v11 = vrot.slane %v2298_v1, 1 }
  0xbe   : > { %4099 = vmatprep.mubr.msk.bf16.mxu0 %vm375_vm2, %v4285_v38  ;;  %v2306_v38 = vshll.u32 %v4296_v5, 16 }
  0xbf   : > { %v2301_v46 = vsel %vm265_vm1, %v2296_v57, %v2300_v11  ;;  %v2304_v30 = vor.u32 %v2302_v19, %v2300_v11 }
  0xc0   : > { %v2308_v10 = vrot.slane %v2306_v38, 1 }
  0xc4   : > { %4072 = vmatmul.mubr.msk.bf16.gmra.mxu1 %vm375_vm2, %v1659_v35  ;;  %v2309_v35 = vsel %vm265_vm1, %v2304_v30, %v2308_v10 }
  0xc5   : > { %4100 = vmatmul.mubr.msk.bf16.gmra.mxu0 %vm375_vm2, %v4286_v31  ;;  %4107 = vmatprep.mubr.msk.bf16.mxu1 %vm375_vm2, %v2253_v39  ;;  %v2312_v31 = vor.u32 %v2310_v22, %v2308_v10 }
  0xc6   : > { %4135 = vmatprep.mubr.msk.bf16.mxu0 %vm375_vm2, %v2553_v33  ;;  %v2569_v33 = vsel %vm718_vm3, %v2566_v3, %v2568_v26 }
  0xc7   : > { %v2317_v41 = vsel %vm265_vm1, %v2312_v31, %v2316_v6 }
  0xcc   : > { %4108 = vmatmul.mubr.msk.bf16.vlgmr.msra.gmra.mxu1 %vm375_vm2, %v2261_v52  ;;  %v2332_v52 = vrot.slane %v2330_v24, 1 }
  0xcd   : > { %4136 = vmatmul.mubr.msk.bf16.vlgmr.msra.gmra.mxu0 %vm375_vm2, %v2555_v51  ;;  %4111 = vmatprep.mubr.msk.bf16.mxu1 %vm375_vm2, %v2269_v53 }
  0xce   : > { %4139 = vmatprep.mubr.msk.bf16.mxu0 %vm375_vm2, %v2557_v50  ;;  %v2333_v20 = vsel %vm265_vm1, %v2328_v16, %v2332_v52 }
  0xd4   : > { %4112 = vmatmul.mubr.msk.bf16.gmra.mxu1 %vm375_vm2, %v2277_v36 }
  0xd5   : > { %4140 = vmatmul.mubr.msk.bf16.gmra.mxu0 %vm375_vm2, %v2559_v60  ;;  %4115 = vmatprep.mubr.msk.bf16.mxu1 %vm375_vm2, %v2285_v43  ;;  %v2575_v43 = vsel %vm718_vm3, %v2572_v48, %v2574_v21 }
  0xd6   : > { %4143 = vmatprep.mubr.msk.bf16.mxu0 %vm375_vm2, %v2561_v14  ;;  %v2336_v14 = vor.u32 %v2334_v55, %v2332_v52 }
  0xd8   : > { %v2341_v2 = vsel %vm265_vm1, %v2336_v14, %v2340_v61 }
  0xdc   : > { %4116 = vmatmul.mubr.msk.bf16.gmra.mxu1 %vm375_vm2, %v2293_v18 }
  0xdd   : > { %4144 = vmatmul.mubr.msk.bf16.gmra.mxu0 %vm375_vm2, %v2563_v13  ;;  %4119 = vmatprep.mubr.msk.bf16.mxu1 %vm375_vm2, %v2301_v46 }
  0xde   : > { %4147 = vmatprep.mubr.msk.bf16.mxu0 %vm375_vm2, %v2565_v17 }
  0xe4   : > { %v4910_v45 = vpop.f32.mrf.mxu1  ;;  %4120 = vmatmul.mubr.msk.bf16.gmra.mxu1 %vm375_vm2, %v2309_v35 }
  0xe5   : > { %v3913_v39 = vpop.f32.mrf.mxu0  ;;  %4148 = vmatmul.mubr.msk.bf16.gmra.mxu0 %vm375_vm2, %v2567_v0  ;;  %4123 = vmatprep.mubr.msk.bf16.mxu1 %vm375_vm2, %v2317_v41 }
  0xe6   : > { %4151 = vmatprep.mubr.msk.bf16.mxu0 %vm375_vm2, %v2569_v33  ;;  %v4915_v51 = vpop.f32.mrf.mxu1 }
  0xe7   : > { %v450_v47 = vpop.f32.mrf.mxu0 }
  0xe8   : > { %v4918_v53 = vpop.f32.mrf.mxu1 }
  0xe9   : > { %v3914_v50 = vpop.f32.mrf.mxu0 }
  0xea   : > { %v4922_v29 = vpop.f32.mrf.mxu1 }
  0xeb   : > { %v453_v9 = vpop.f32.mrf.mxu0 }
  0xec   : > { %v4927_v59 = vpop.f32.mrf.mxu1  ;;  %4124 = vmatmul.mubr.msk.bf16.gmra.mxu1 %vm375_vm2, %v2325_v7 }
  0xed   : > { %v3917_v58 = vpop.f32.mrf.mxu0  ;;  %4152 = vmatmul.mubr.msk.bf16.gmra.mxu0 %vm375_vm2, %v2571_v4  ;;  %4127 = vmatprep.mubr.msk.bf16.mxu1 %vm375_vm2, %v2333_v20 }
  0xee   : > { %4155 = vmatprep.mubr.msk.bf16.mxu0 %vm375_vm2, %v2573_v44  ;;  %v4931_v36 = vpop.f32.mrf.mxu1 }
  0xef   : > { %v466_v60 = vpop.f32.mrf.mxu0 }
  0xf0   : > { %v4934_v63 = vpop.f32.mrf.mxu1 }
  0xf1   : > { %v3918_v62 = vpop.f32.mrf.mxu0 }
  0xf2   : > { %v4937_v15 = vpop.f32.mrf.mxu1 }
  0xf3   : > { %v469_v1 = vpop.f32.mrf.mxu0 }
  0xf4   : > { %v4940_v5 = vpop.f32.mrf.mxu1  ;;  %4128 = vmatmul.mubr.msk.bf16.gmra.mxu1 %vm375_vm2, %v2341_v2 }
  0xf5   : > { %v3921_v25 = vpop.f32.mrf.mxu0  ;;  %4156 = vmatmul.mubr.msk.bf16.gmra.mxu0 %vm375_vm2, %v2575_v43 }
  0xf6   : > { %v4943_v57 = vpop.f32.mrf.mxu1 }
  0xf7   : > { %v482_v54 = vpop.f32.mrf.mxu0 }
  0xf8   : > { %v4945_v12 = vpop.f32.mrf.mxu1 }
  0xf9   : > { %v3922_v11 = vpop.f32.mrf.mxu0 }
  0xfa   : > { %v4947_v17 = vpop.f32.mrf.mxu1 }
  0xfb   : > { %v485_v13 = vpop.f32.mrf.mxu0 }
  0xfc   : > { %v3941_v18 = vpop.f32.mrf.mxu1 }
  0xfd   : > { %v3969_v38 = vpop.f32.mrf.mxu0  ;;  %v624_v46 = vadd.f32 %v3941_v18, %v3913_v39 }
  0xfe   : > { %v615_v22 = vpop.f32.mrf.mxu1 }
  0xff   : > { %v826_v19 = vpop.f32.mrf.mxu0  ;;  %v4949_v3 = vadd.f32 %v3969_v38, %v624_v46  ;;  %v616_v10 = vadd.f32 %v615_v22, %v450_v47 }
 0x100   : > { %v3942_v26 = vpop.f32.mrf.mxu1 }
 0x101   : > { %v3970_v23 = vpop.f32.mrf.mxu0  ;;  %v4951_v30 = vadd.f32 %v826_v19, %v616_v10  ;;  %v627_v31 = vadd.f32 %v3942_v26, %v3914_v50 }
 0x102   : > { %v618_v6 = vpop.f32.mrf.mxu1 }
 0x103   : > { %v829_v27 = vpop.f32.mrf.mxu0  ;;  %v4953_v0 = vadd.f32 %v3970_v23, %v627_v31  ;;  %v619_v33 = vadd.f32 %v618_v6, %v453_v9 }
 0x104   : > { %v3945_v34 = vpop.f32.mrf.mxu1 }
 0x105   : > { %v3973_v32 = vpop.f32.mrf.mxu0  ;;  %v4955_v37 = vadd.f32 %v829_v27, %v619_v33  ;;  %v640_v39 = vadd.f32 %v3945_v34, %v3917_v58 }
 0x106   : > { %v631_v41 = vpop.f32.mrf.mxu1 }
 0x107   : > { %v842_v35 = vpop.f32.mrf.mxu0  ;;  %v4957_v24 = vadd.f32 %v3973_v32, %v640_v39  ;;  %v632_v42 = vadd.f32 %v631_v41, %v466_v60 }
 0x108   : > { %v3946_v47 = vpop.f32.mrf.mxu1 }
 0x109   : > { %v3974_v28 = vpop.f32.mrf.mxu0  ;;  %v4959_v48 = vadd.f32 %v842_v35, %v632_v42  ;;  %v643_v49 = vadd.f32 %v3946_v47, %v3918_v62 }
 0x10a   : > { %v634_v8 = vpop.f32.mrf.mxu1 }
 0x10b   : > { %v845_v40 = vpop.f32.mrf.mxu0  ;;  %v4961_v16 = vadd.f32 %v3974_v28, %v643_v49  ;;  %v635_v52 = vadd.f32 %v634_v8, %v469_v1 }
 0x10c   : > { %v3949_v4 = vpop.f32.mrf.mxu1 }
 0x10d   : > { %v3977_v50 = vpop.f32.mrf.mxu0  ;;  %v4963_v44 = vadd.f32 %v845_v40, %v635_v52  ;;  %v656_v7 = vadd.f32 %v3949_v4, %v3921_v25 }
 0x10e   : > { %v647_v55 = vpop.f32.mrf.mxu1 }
 0x10f   : > { %v858_v9 = vpop.f32.mrf.mxu0  ;;  %v4965_v58 = vadd.f32 %v3977_v50, %v656_v7  ;;  %v648_v20 = vadd.f32 %v647_v55, %v482_v54 }
 0x110   : > { %v3950_v21 = vpop.f32.mrf.mxu1 }
 0x111   : > { %v3978_v56 = vpop.f32.mrf.mxu0  ;;  %v4967_v14 = vadd.f32 %v858_v9, %v648_v20  ;;  %v659_v61 = vadd.f32 %v3950_v21, %v3922_v11 }
 0x112   : > { %v650_v62 = vpop.f32.mrf.mxu1 }
 0x113   : > { %v861_v60 = vpop.f32.mrf.mxu0  ;;  %v4969_v2 = vadd.f32 %v3978_v56, %v659_v61  ;;  %v651_v1 = vadd.f32 %v650_v62, %v485_v13 }
 0x114   : > { %v3953_v38 = vpop.f32.mrf.mxu1 }
 0x115   : > { %v3981_v43 = vpop.f32.mrf.mxu0  ;;  %v4971_v19 = vadd.f32 %v861_v60, %v651_v1  ;;  %v672_v25 = vadd.f32 %v3953_v38, %v4910_v45 }
 0x116   : > { %v663_v46 = vpop.f32.mrf.mxu1 }
 0x117   : > { %v874_v18 = vpop.f32.mrf.mxu0  ;;  %v4974_v23 = vadd.f32 %v3981_v43, %v672_v25  ;;  %v664_v54 = vadd.f32 %v663_v46, %v4915_v51 }
 0x118   : > { %v3954_v10 = vpop.f32.mrf.mxu1 }
 0x119   : > { %v3982_v22 = vpop.f32.mrf.mxu0  ;;  %v4977_v11 = vadd.f32 %v874_v18, %v664_v54  ;;  %v675_v27 = vadd.f32 %v3954_v10, %v4918_v53 }
 0x11a   : > { %v666_v31 = vpop.f32.mrf.mxu1 }
 0x11b   : > { %v877_v26 = vpop.f32.mrf.mxu0  ;;  %v4980_v6 = vadd.f32 %v3982_v22, %v675_v27  ;;  %v667_v32 = vadd.f32 %v666_v31, %v4922_v29 }
 0x11c   : > { %v3957_v33 = vpop.f32.mrf.mxu1 }
 0x11d   : > { %v3985_v13 = vpop.f32.mrf.mxu0  ;;  %v4983_v34 = vadd.f32 %v877_v26, %v667_v32  ;;  %v688_v35 = vadd.f32 %v3957_v33, %v4927_v59 }
 0x11e   : > { %v679_v39 = vpop.f32.mrf.mxu1 }
 0x11f   : > { %v890_v45 = vpop.f32.mrf.mxu0  ;;  %v4986_v41 = vadd.f32 %v3985_v13, %v688_v35  ;;  %v680_v28 = vadd.f32 %v679_v39, %v4931_v36 }
 0x120   : > { %v3958_v42 = vpop.f32.mrf.mxu1 }
 0x121   : > { %v3986_v51 = vpop.f32.mrf.mxu0  ;;  %v4989_v47 = vadd.f32 %v890_v45, %v680_v28  ;;  %v691_v40 = vadd.f32 %v3958_v42, %v4934_v63 }
 0x122   : > { %v682_v49 = vpop.f32.mrf.mxu1 }
 0x123   : > { %v893_v53 = vpop.f32.mrf.mxu0  ;;  %v4992_v8 = vadd.f32 %v3986_v51, %v691_v40  ;;  %v683_v50 = vadd.f32 %v682_v49, %v4937_v15 }
 0x124   : > { %v3961_v52 = vpop.f32.mrf.mxu1 }
 0x125   : > { %v3989_v29 = vpop.f32.mrf.mxu0  ;;  %v4995_v4 = vadd.f32 %v893_v53, %v683_v50  ;;  %v704_v9 = vadd.f32 %v3961_v52, %v4940_v5 }
 0x126   : > { %v695_v7 = vpop.f32.mrf.mxu1 }
 0x127   : > { %v906_v59 = vpop.f32.mrf.mxu0  ;;  %v4998_v55 = vadd.f32 %v3989_v29, %v704_v9  ;;  %v696_v56 = vadd.f32 %v695_v7, %v4943_v57 }
 0x128   : > { %v3962_v20 = vpop.f32.mrf.mxu1 }
 0x129   : > { %v3990_v36 = vpop.f32.mrf.mxu0  ;;  %v5001_v21 = vadd.f32 %v906_v59, %v696_v56  ;;  %v707_v60 = vadd.f32 %v3962_v20, %v4945_v12 }
 0x12a   : > { %v698_v61 = vpop.f32.mrf.mxu1 }
 0x12b   : > { %v909_v63 = vpop.f32.mrf.mxu0  ;;  %v5004_v62 = vadd.f32 %v3990_v36, %v707_v60  ;;  %v699_v43 = vadd.f32 %v698_v61, %v4947_v17 }
 0x12c   : > { %v3997_v1 = vpop.f32.mrf.mxu1 }
 0x12d   : > { %v4025_v15 = vpop.f32.mrf.mxu0  ;;  %v5007_v38 = vadd.f32 %v909_v63, %v699_v43  ;;  %v1212_v18 = vadd.f32 %v3997_v1, %v4949_v3 }
 0x12e   : > { %v1115_v25 = vpop.f32.mrf.mxu1 }
 0x12f   : > { %v1508_v5 = vpop.f32.mrf.mxu0  ;;  %v5010_v46 = vadd.f32 %v4025_v15, %v1212_v18  ;;  %v1210_v22 = vadd.f32 %v1115_v25, %v4951_v30 }
 0x130   : > { %v3998_v54 = vpop.f32.mrf.mxu1 }
 0x131   : > { %v4026_v57 = vpop.f32.mrf.mxu0  ;;  %v5013_v10 = vadd.f32 %v1508_v5, %v1210_v22  ;;  %v1213_v26 = vadd.f32 %v3998_v54, %v4953_v0 }
 0x132   : > { %v1118_v27 = vpop.f32.mrf.mxu1 }
 0x133   : > { %v1511_v12 = vpop.f32.mrf.mxu0  ;;  %v5016_v31 = vadd.f32 %v4026_v57, %v1213_v26  ;;  %v1211_v13 = vadd.f32 %v1118_v27, %v4955_v37 }
 0x134   : > { %v4001_v32 = vpop.f32.mrf.mxu1 }
 0x135   : > { %v4029_v17 = vpop.f32.mrf.mxu0  ;;  %v5019_v33 = vadd.f32 %v1511_v12, %v1211_v13  ;;  %v1216_v45 = vadd.f32 %v4001_v32, %v4957_v24 }
 0x136   : > { %v1131_v35 = vpop.f32.mrf.mxu1 }
 0x137   : > { %v1524_v3 = vpop.f32.mrf.mxu0  ;;  %v5022_v39 = vadd.f32 %v4029_v17, %v1216_v45  ;;  %v1214_v51 = vadd.f32 %v1131_v35, %v4959_v48 }
 0x138   : > { %v4002_v28 = vpop.f32.mrf.mxu1 }
 0x139   : > { %v4030_v30 = vpop.f32.mrf.mxu0  ;;  %v5025_v42 = vadd.f32 %v1524_v3, %v1214_v51  ;;  %v1217_v53 = vadd.f32 %v4002_v28, %v4961_v16 }
 0x13a   : > { %v1134_v40 = vpop.f32.mrf.mxu1 }
 0x13b   : > { %v1527_v0 = vpop.f32.mrf.mxu0  ;;  %v5028_v49 = vadd.f32 %v4030_v30, %v1217_v53  ;;  %v1215_v29 = vadd.f32 %v1134_v40, %v4963_v44 }
 0x13c   : > { %v4005_v50 = vpop.f32.mrf.mxu1 }
 0x13d   : > { %v4033_v37 = vpop.f32.mrf.mxu0  ;;  %v5031_v52 = vadd.f32 %v1527_v0, %v1215_v29  ;;  %v1220_v59 = vadd.f32 %v4005_v50, %v4965_v58 }
 0x13e   : > { %v1147_v9 = vpop.f32.mrf.mxu1 }
 0x13f   : > { %v1540_v24 = vpop.f32.mrf.mxu0  ;;  %v5034_v7 = vadd.f32 %v4033_v37, %v1220_v59  ;;  %v1218_v36 = vadd.f32 %v1147_v9, %v4967_v14 }
 0x140   : > { %v4006_v56 = vpop.f32.mrf.mxu1 }
 0x141   : > { %v4034_v48 = vpop.f32.mrf.mxu0  ;;  %v5037_v20 = vadd.f32 %v1540_v24, %v1218_v36  ;;  %v1221_v63 = vadd.f32 %v4006_v56, %v4969_v2 }
 0x142   : > { %v1150_v60 = vpop.f32.mrf.mxu1 }
 0x143   : > { %v1543_v16 = vpop.f32.mrf.mxu0  ;;  %v5040_v61 = vadd.f32 %v4034_v48, %v1221_v63  ;;  %v1219_v15 = vadd.f32 %v1150_v60, %v4971_v19 }
 0x144   : > { %v4009_v43 = vpop.f32.mrf.mxu1 }
 0x145   : > { %v4037_v44 = vpop.f32.mrf.mxu0  ;;  %v5043_v1 = vadd.f32 %v1543_v16, %v1219_v15  ;;  %v1224_v5 = vadd.f32 %v4009_v43, %v4974_v23 }
 0x146   : > { %v1163_v18 = vpop.f32.mrf.mxu1 }
 0x147   : > { %v1556_v58 = vpop.f32.mrf.mxu0  ;;  %v5046_v25 = vadd.f32 %v4037_v44, %v1224_v5  ;;  %v1222_v57 = vadd.f32 %v1163_v18, %v4977_v11 }
 0x148   : > { %v4010_v22 = vpop.f32.mrf.mxu1 }
 0x149   : > { %v4038_v14 = vpop.f32.mrf.mxu0  ;;  %v5049_v54 = vadd.f32 %v1556_v58, %v1222_v57  ;;  %v1225_v12 = vadd.f32 %v4010_v22, %v4980_v6 }
 0x14a   : > { %v1166_v26 = vpop.f32.mrf.mxu1 }
 0x14b   : > { %v1559_v2 = vpop.f32.mrf.mxu0  ;;  %v5052_v27 = vadd.f32 %v4038_v14, %v1225_v12  ;;  %v1223_v17 = vadd.f32 %v1166_v26, %v4983_v34 }
 0x14c   : > { %v4013_v13 = vpop.f32.mrf.mxu1 }
 0x14d   : > { %v4041_v19 = vpop.f32.mrf.mxu0  ;;  %v5055_v32 = vadd.f32 %v1559_v2, %v1223_v17  ;;  %v1228_v3 = vadd.f32 %v4013_v13, %v4986_v41 }
 0x14e   : > { %v1179_v45 = vpop.f32.mrf.mxu1 }
 0x14f   : > { %v1572_v23 = vpop.f32.mrf.mxu0  ;;  %v5058_v35 = vadd.f32 %v4041_v19, %v1228_v3  ;;  %v1226_v30 = vadd.f32 %v1179_v45, %v4989_v47 }
 0x150   : > { %v4014_v51 = vpop.f32.mrf.mxu1 }
 0x151   : > { %v4042_v11 = vpop.f32.mrf.mxu0  ;;  %v5061_v28 = vadd.f32 %v1572_v23, %v1226_v30  ;;  %v1229_v0 = vadd.f32 %v4014_v51, %v4992_v8 }
 0x152   : > { %v1182_v53 = vpop.f32.mrf.mxu1 }
 0x153   : > { %v1575_v6 = vpop.f32.mrf.mxu0  ;;  %5405 = vst [vmem:[#allocation5_spill] sm:$0xff] %v5061_v28  ;;  %v5064_v40 = vadd.f32 %v4042_v11, %v1229_v0  ;;  %v1227_v37 = vadd.f32 %v1182_v53, %v4995_v4 }
 0x154   : > { %v4017_v29 = vpop.f32.mrf.mxu1 }
 0x155   : > { %v4045_v34 = vpop.f32.mrf.mxu0  ;;  %5406 = vst [vmem:[#allocation6_spill] sm:$0xff] %v5064_v40  ;;  %v5067_v50 = vadd.f32 %v1575_v6, %v1227_v37  ;;  %v1232_v24 = vadd.f32 %v4017_v29, %v4998_v55 }
 0x156   : > { %v1195_v59 = vpop.f32.mrf.mxu1 }
 0x157   : > { %v1588_v41 = vpop.f32.mrf.mxu0  ;;  %5407 = vst [vmem:[#allocation7_spill] sm:$0xff] %v5067_v50  ;;  %v5070_v9 = vadd.f32 %v4045_v34, %v1232_v24  ;;  %v1230_v48 = vadd.f32 %v1195_v59, %v5001_v21 }
 0x158   : > { %v4018_v36 = vpop.f32.mrf.mxu1 }
 0x159   : > { %v4046_v47 = vpop.f32.mrf.mxu0  ;;  %5408 = vst [vmem:[#allocation8_spill] sm:$0xff] %v5070_v9  ;;  %v5073_v56 = vadd.f32 %v1588_v41, %v1230_v48  ;;  %v1233_v16 = vadd.f32 %v4018_v36, %v5004_v62  ;;  %v2832_v9 = vlaneseq }
 0x15a   : > { %v1198_v63 = vpop.f32.mrf.mxu1 }
 0x15b   : > { %v1591_v8 = vpop.f32.mrf.mxu0  ;;  %5409 = vst [vmem:[#allocation9_spill] sm:$0xff] %v5073_v56  ;;  %v5076_v60 = vadd.f32 %v4046_v47, %v1233_v16  ;;  %v1231_v44 = vadd.f32 %v1198_v63, %v5007_v38 }
 0x15c   : > { %v4053_v15 = vpop.f32.mrf.mxu1 }
 0x15d   : > { %v4081_v4 = vpop.f32.mrf.mxu0  ;;  %5410 = vst [vmem:[#allocation10_spill] sm:$0xff] %v5076_v60  ;;  %v5079_v43 = vadd.f32 %v1591_v8, %v1231_v44  ;;  %v1839_v40 = vadd.f32 %v4053_v15, %v5010_v46 }
 0x15e   : > { %v1742_v58 = vpop.f32.mrf.mxu1 }
 0x15f   : > { %v2031_v55 = vpop.f32.mrf.mxu0  ;;  %5411 = vst [vmem:[#allocation11_spill] sm:$0xff] %v5079_v43 }
 0x160   : > { %v4054_v18 = vpop.f32.mrf.mxu1 }
 0x161   : > { %v4082_v5 = vpop.f32.mrf.mxu0 }
 0x162   : > { %v1745_v14 = vpop.f32.mrf.mxu1 }
 0x163   : > { %v5081_v21 = vpop.f32.mrf.mxu0  ;;  %v1838_v46 = vadd.f32 %v1745_v14, %v5019_v33  ;;  %v5174_v14 = vld [vmem:[%s5401_s2] ss:$0 sm:$0xff] }
 0x164   : > { %v4057_v22 = vpop.f32.mrf.mxu1 }
 0x165   : > { %v5083_v57 = vpop.f32.mrf.mxu0 }
 0x166   : > { %v1758_v2 = vpop.f32.mrf.mxu1 }
 0x167   : > { %v5085_v62 = vpop.f32.mrf.mxu0  ;;  %v1841_v33 = vadd.f32 %v1758_v2, %v5025_v42 }
 0x168   : > { %v5089_v26 = vpop.f32.mrf.mxu1 }
 0x169   : > { %v5087_v12 = vpop.f32.mrf.mxu0 }
 0x16a   : > { %v5093_v19 = vpop.f32.mrf.mxu1 }
 0x16b   : > { %v5091_v38 = vpop.f32.mrf.mxu0 }
 0x16c   : > { %v5097_v13 = vpop.f32.mrf.mxu1 }
 0x16d   : > { %v5095_v17 = vpop.f32.mrf.mxu0 }
 0x16e   : > { %v5101_v3 = vpop.f32.mrf.mxu1 }
 0x16f   : > { %v5099_v23 = vpop.f32.mrf.mxu0 }
 0x170   : > { %v5105_v11 = vpop.f32.mrf.mxu1 }
 0x171   : > { %v5103_v45 = vpop.f32.mrf.mxu0 }
 0x172   : > { %v5109_v51 = vpop.f32.mrf.mxu1 }
 0x173   : > { %v5107_v30 = vpop.f32.mrf.mxu0 }
 0x174   : > { %v5113_v0 = vpop.f32.mrf.mxu1 }
 0x175   : > { %v5111_v6 = vpop.f32.mrf.mxu0 }
 0x176   : > { %v5117_v34 = vpop.f32.mrf.mxu1 }
 0x177   : > { %v5115_v53 = vpop.f32.mrf.mxu0 }
 0x178   : > { %v5121_v29 = vpop.f32.mrf.mxu1 }
 0x179   : > { %v5119_v37 = vpop.f32.mrf.mxu0 }
 0x17a   : > { %v5125_v24 = vpop.f32.mrf.mxu1 }
 0x17b   : > { %v5123_v41 = vpop.f32.mrf.mxu0 }
 0x17c   : > { %5412 = vst [vmem:[#allocation12_spill] sm:$0xff] %v5123_v41  ;;  %v5129_v47 = vpop.f32.mrf.mxu1 }
 0x17d   : > { %v5127_v59 = vpop.f32.mrf.mxu0 }
 0x17e   : > { %5413 = vst [vmem:[#allocation13_spill] sm:$0xff] %v5127_v59  ;;  %v5133_v36 = vpop.f32.mrf.mxu1  ;;  %v2128_v59 = vadd.f32 %v4081_v4, %v1839_v40 }
 0x17f   : > { %v5131_v48 = vpop.f32.mrf.mxu0  ;;  %5415 = vst [vmem:[#allocation15_spill] sm:$0xff] %v5133_v36 }
 0x180   : > { %5414 = vst [vmem:[#allocation14_spill] sm:$0xff] %v5131_v48  ;;  %v5137_v16 = vpop.f32.mrf.mxu1 }
 0x181   : > { %v5135_v8 = vpop.f32.mrf.mxu0  ;;  %5417 = vst [vmem:[#allocation17_spill] sm:$0xff] %v5137_v16 }
 0x182   : > { %5416 = vst [vmem:[#allocation16_spill] sm:$0xff] %v5135_v8  ;;  %v5141_v44 = vpop.f32.mrf.mxu1 }
 0x183   : > { %v5139_v63 = vpop.f32.mrf.mxu0  ;;  %5419 = vst [vmem:[#allocation19_spill] sm:$0xff] %v5141_v44  ;;  %v1837_v44 = vadd.f32 %v1742_v58, %v5013_v10  ;;  %v1843_v58 = vadd.f32 %v4057_v22, %v5022_v39 }
 0x184   : > { %5418 = vst [vmem:[#allocation18_spill] sm:$0xff] %v5139_v63  ;;  %v5145_v60 = vpop.f32.mrf.mxu1  ;;  %v5158_v63 = vshrl.u32 %v2832_v9, 7 }
 0x185   : > { %v5143_v43 = vpop.f32.mrf.mxu0  ;;  %5421 = vst [vmem:[#allocation21_spill] sm:$0xff] %v5145_v60  ;;  %v2126_v36 = vadd.f32 %v2031_v55, %v1837_v44  ;;  %v2127_v55 = vadd.f32 %v5081_v21, %v1838_v46  ;;  %v2132_v21 = vadd.f32 %v5083_v57, %v1843_v58  ;;  %v2130_v46 = vadd.f32 %v5085_v62, %v1841_v33 }
 0x186   : > { %5420 = vst [vmem:[#allocation20_spill] sm:$0xff] %v5143_v43  ;;  %v5149_v50 = vpop.f32.mrf.mxu1  ;;  %v2840_v40 = vadd.s32 56, %v5158_v63  ;;  %v1847_v62 = vadd.f32 %v5097_v13, %v5034_v7  ;;  %v1845_v7 = vadd.f32 %v5101_v3, %v5037_v20 }
 0x187   : > { %v5147_v56 = vpop.f32.mrf.mxu0  ;;  %5423 = vst [vmem:[#allocation23_spill] sm:$0xff] %v5149_v50 }
 0x188   : > { %5422 = vst [vmem:[#allocation22_spill] sm:$0xff] %v5147_v56  ;;  %v5154_v8 = vpop.f32.mrf.mxu1  ;;  %v1840_v56 = vadd.f32 %v4054_v18, %v5016_v31 }
 0x189   : > { %v5151_v48 = vpop.f32.mrf.mxu0  ;;  %5425 = vst [vmem:[#allocation25_spill] sm:$0xff] %v5154_v8 }
 0x18a   : > { %5424 = vst [vmem:[#allocation24_spill] sm:$0xff] %v5151_v48  ;;  %v5161_v43 = vpop.f32.mrf.mxu1  ;;  %v2836_v48 = vadd.s32 24, %v5158_v63  ;;  %v2129_v10 = vadd.f32 %v4082_v5, %v1840_v56 }
 0x18b   : > { %v5156_v16 = vpop.f32.mrf.mxu0  ;;  %5427 = vst [vmem:[#allocation27_spill] sm:$0xff] %v5161_v43 }
 0x18c   : > { %5426 = vst [vmem:[#allocation26_spill] sm:$0xff] %v5156_v16  ;;  %v4109_v41 = vpop.f32.mrf.mxu1  ;;  %v2834_v16 = vadd.s32 8, %v5158_v63  ;;  %v2882_v18 = vand.u32 15, %v2836_v48  ;;  %v2910_v48 = vand.u32 15, %v2840_v40 }
 0x18d   : > { %v4137_v60 = vpop.f32.mrf.mxu0  ;;  %v2521_v15 = vadd.f32 %v4109_v41, %v2128_v59  ;;  %v5179_v59 = vadd.s32 88, %v5158_v63 }
 0x18e   : > { %v2424_v8 = vpop.f32.mrf.mxu1  ;;  %v2868_v5 = vand.u32 15, %v2834_v16  ;;  %vm5187_vm4 = vcmp.lt.s32.totalorder %v2882_v18, 12  ;;  %vm5206_vm6 = vcmp.lt.s32.totalorder %v2910_v48, 12  ;;  %v2136_v48 = vadd.f32 %v5095_v17, %v1847_v62 }
 0x18f   : > { %v2658_v50 = vpop.f32.mrf.mxu0  ;;  %v2519_v43 = vadd.f32 %v2424_v8, %v2126_v36  ;;  %v2755_v31 = vadd.f32 %v4137_v60, %v2521_v15  ;;  %v2838_v60 = vadd.s32 40, %v5158_v63  ;;  %v1844_v36 = vadd.f32 %v5089_v26, %v5028_v49 }
 0x190   : > { %v4110_v4 = vpop.f32.mrf.mxu1  ;;  %vm5198_vm5 = vcmp.lt.s32.totalorder %v2868_v5, 12  ;;  %v2938_v58 = vand.u32 15, %v5179_v59 }
 0x191   : > { %v4138_v9 = vpop.f32.mrf.mxu0  ;;  %v2522_v41 = vadd.f32 %v4110_v4, %v2129_v10  ;;  %v2753_v56 = vadd.f32 %v2658_v50, %v2519_v43  ;;  %v1842_v50 = vadd.f32 %v5093_v19, %v5031_v52  ;;  %v2786_v43 = vadd.f32 %v5174_v14, %v2755_v31 }
 0x192   : > { %v2427_v39 = vpop.f32.mrf.mxu1  ;;  %v2896_v10 = vand.u32 15, %v2838_v60  ;;  %v2133_v18 = vadd.f32 %v5087_v12, %v1844_v36  ;;  %v1848_v36 = vadd.f32 %v5105_v11, %v5040_v61  ;;  %v2134_v61 = vadd.f32 %v5099_v23, %v1845_v7 }
 0x193   : > { %v2661_v28 = vpop.f32.mrf.mxu0  ;;  %v2756_v42 = vadd.f32 %v4138_v9, %v2522_v41  ;;  %v2520_v2 = vadd.f32 %v2427_v39, %v2127_v55  ;;  %v2784_v26 = vadd.f32 %v5174_v14, %v2753_v56  ;;  %v2131_v55 = vadd.f32 %v5091_v38, %v1842_v50 }
 0x194   : > { %v4113_v16 = vpop.f32.mrf.mxu1  ;;  %v2810_v33 = vmax.f32 %v2786_v43, 0.0  ;;  %v2842_v39 = vadd.s32 72, %v5158_v63  ;;  %vm5226_vm7 = vcmp.lt.s32.totalorder %v2896_v10, 12  ;;  %vm5242_vm8 = vcmp.lt.s32.totalorder %v2938_v58, 12  ;;  %v5442_v43 = vld [vmem:[#allocation5_spill] sm:$0xff] }
 0x195   : > { %v4141_v22 = vpop.f32.mrf.mxu0  ;;  %v2787_v57 = vadd.f32 %v5174_v14, %v2756_v42  ;;  %v2754_v15 = vadd.f32 %v2661_v28, %v2520_v2  ;;  %v2525_v49 = vadd.f32 %v4113_v16, %v2132_v21  ;;  %v2808_v59 = vmax.f32 %v2784_v26, 0.0 }
 0x196   : > { %v2440_v19 = vpop.f32.mrf.mxu1  ;;  %v2848_v16 = vadd.s32 120, %v5158_v63  ;;  %v1852_v7 = vadd.f32 %v5121_v29, %v5052_v27  ;;  %v1850_v27 = vadd.f32 %v5125_v24, %v5055_v32 }
 0x197   : > { %v2674_v44 = vpop.f32.mrf.mxu0  ;;  %v2811_v40 = vmax.f32 %v2787_v57, 0.0  ;;  %v2785_v31 = vadd.f32 %v5174_v14, %v2754_v15  ;;  %v2523_v4 = vadd.f32 %v2440_v19, %v2130_v46  ;;  %v2759_v60 = vadd.f32 %v4141_v22, %v2525_v49 }
 0x198   : > { %v4114_v41 = vpop.f32.mrf.mxu1  ;;  %v1846_v57 = vadd.f32 %v5109_v51, %v5043_v1  ;;  %v1851_v15 = vadd.f32 %v5113_v0, %v5046_v25  ;;  %v2924_v1 = vand.u32 15, %v2842_v39  ;;  %v1849_v25 = vadd.f32 %v5117_v34, %v5049_v54 }
 0x199   : > { %v4142_v9 = vpop.f32.mrf.mxu0  ;;  %v3220_v13 = vsel %vm5187_vm4, %v2811_v40, 0.0  ;;  %v2809_v5 = vmax.f32 %v2785_v31, 0.0  ;;  %v2757_v42 = vadd.f32 %v2674_v44, %v2523_v4  ;;  %v2526_v12 = vadd.f32 %v4114_v41, %v2133_v18 }
 0x19a   : > { %v3718_v21 = vpack.c.bf16 %v3220_v13, %v2810_v33  ;;  %v2443_v2 = vpop.f32.mrf.mxu1  ;;  %v2790_v11 = vadd.f32 %v5174_v14, %v2759_v60  ;;  %v2966_v31 = vand.u32 15, %v2848_v16  ;;  %v5249_v4 = vadd.s32 104, %v5158_v63 }
 0x19b   : > { %v2677_v56 = vpop.f32.mrf.mxu0  ;;  %v3218_v50 = vsel %vm5198_vm5, %v2809_v5, 0.0  ;;  %v2524_v20 = vadd.f32 %v2443_v2, %v2131_v55  ;;  %v2760_v22 = vadd.f32 %v4142_v9, %v2526_v12  ;;  %v2788_v49 = vadd.f32 %v5174_v14, %v2757_v42 }
 0x19c   : > { %3770 = vst [vmem:[%s5223_s6 + $0x8] sm:$0xff] %v3718_v21   ;;  %v3713_v3 = vpack.c.bf16 %v3218_v50, %v2808_v59  ;;  %v4117_v8 = vpop.f32.mrf.mxu1  ;;  %v2137_v9 = vadd.f32 %v5103_v45, %v1848_v36  ;;  %v2814_v18 = vmax.f32 %v2790_v11, 0.0  ;;  %v2135_v58 = vadd.f32 %v5107_v30, %v1846_v57 }
 0x19d   : > { %v4145_v38 = vpop.f32.mrf.mxu0  ;;  %v2758_v44 = vadd.f32 %v2677_v56, %v2524_v20  ;;  %v2529_v46 = vadd.f32 %v4117_v8, %v2136_v48  ;;  %v2791_v26 = vadd.f32 %v5174_v14, %v2760_v22  ;;  %v2140_v41 = vadd.f32 %v5111_v6, %v1851_v15  ;;  %v5443_v8 = vld [vmem:[#allocation15_spill] sm:$0xff] }
 0x19e   : > { %3714 = vst [vmem:[%s5223_s6] sm:$0xff] %v3713_v3   ;;  %v2456_v52 = vpop.f32.mrf.mxu1  ;;  %v2812_v56 = vmax.f32 %v2788_v49, 0.0  ;;  %vm5259_vm9 = vcmp.lt.s32.totalorder %v2924_v1, 12  ;;  %v2138_v12 = vadd.f32 %v5115_v53, %v1849_v25  ;;  %vm5272_vm10 = vcmp.lt.s32.totalorder %v2966_v31, 12  ;;  %v5445_v49 = vld [vmem:[#allocation13_spill] sm:$0xff]  ;;  %v5462_v3 = vld [vmem:[#allocation22_spill] sm:$0xff] }
 0x19f   : > { %v2690_v17 = vpop.f32.mrf.mxu0  ;;  %v2789_v23 = vadd.f32 %v5174_v14, %v2758_v44  ;;  %v2527_v10 = vadd.f32 %v2456_v52, %v2134_v61  ;;  %v2815_v51 = vmax.f32 %v2791_v26, 0.0  ;;  %v2763_v55 = vadd.f32 %v4145_v38, %v2529_v46  ;;  %v5444_v44 = vld [vmem:[#allocation12_spill] sm:$0xff]  ;;  %v5446_v52 = vld [vmem:[#allocation6_spill] sm:$0xff] }
 0x1a0   : > { %v4118_v0 = vpop.f32.mrf.mxu1  ;;  %v1855_v38 = vadd.f32 %v5129_v47, %v5058_v35  ;;  %v2141_v53 = vadd.f32 %v5119_v37, %v1852_v7  ;;  %v2952_v22 = vand.u32 15, %v5249_v4  ;;  %v1853_v35 = vadd.f32 %v5443_v8, %v5442_v43  ;;  %v5448_v4 = vld [vmem:[#allocation14_spill] sm:$0xff] }
 0x1a1   : > { %v4146_v19 = vpop.f32.mrf.mxu0  ;;  %v2813_v45 = vmax.f32 %v2789_v23, 0.0  ;;  %v2530_v33 = vadd.f32 %v4118_v0, %v2137_v9  ;;  %v3224_v54 = vsel %vm5206_vm6, %v2815_v51, 0.0  ;;  %v2761_v60 = vadd.f32 %v2690_v17, %v2527_v10 }
 0x1a2   : > { %v2459_v34 = vpop.f32.mrf.mxu1  ;;  %v3728_v13 = vpack.c.bf16 %v3224_v54, %v2814_v18  ;;  %v2794_v29 = vadd.f32 %v5174_v14, %v2763_v55  ;;  %v2139_v46 = vadd.f32 %v5444_v44, %v1850_v27  ;;  %v5284_v37 = vadd.s32 152, %v5158_v63 }
 0x1a3   : > { %v2693_v40 = vpop.f32.mrf.mxu0  ;;  %v3222_v5 = vsel %vm5226_vm7, %v2813_v45, 0.0  ;;  %v2764_v30 = vadd.f32 %v4146_v19, %v2530_v33  ;;  %v2528_v21 = vadd.f32 %v2459_v34, %v2135_v58  ;;  %v2792_v32 = vadd.f32 %v5174_v14, %v2761_v60  ;;  %v5447_v19 = vld [vmem:[#allocation17_spill] sm:$0xff] }
 0x1a4   : > { %v3723_v59 = vpack.c.bf16 %v3222_v5, %v2812_v56  ;;  %v4121_v28 = vpop.f32.mrf.mxu1  ;;  %3772 = vst [vmem:[%s5223_s6 + $0x18] sm:$0xff] %v3728_v13   ;;  %v2818_v57 = vmax.f32 %v2794_v29, 0.0  ;;  %v2144_v26 = vadd.f32 %v5445_v49, %v1855_v38  ;;  %v1856_v9 = vadd.f32 %v5447_v19, %v5446_v52  ;;  %v5450_v56 = vld [vmem:[#allocation19_spill] sm:$0xff]  ;;  %v5451_v13 = vld [vmem:[#allocation16_spill] sm:$0xff]  ;;  %v5456_v38 = vld [vmem:[#allocation9_spill] sm:$0xff] }
 0x1a5   : > { %v4149_v39 = vpop.f32.mrf.mxu0  ;;  %v2533_v2 = vadd.f32 %v4121_v28, %v2140_v41  ;;  %v2795_v48 = vadd.f32 %v5174_v14, %v2764_v30  ;;  %v2762_v36 = vadd.f32 %v2693_v40, %v2528_v21  ;;  %v2816_v51 = vmax.f32 %v2792_v32, 0.0  ;;  %v5449_v41 = vld [vmem:[#allocation7_spill] sm:$0xff]  ;;  %v5454_v28 = vld [vmem:[#allocation8_spill] sm:$0xff] }
 0x1a6   : > { %3771 = vst [vmem:[%s5223_s6 + $0x10] sm:$0xff] %v3723_v59   ;;  %v2472_v50 = vpop.f32.mrf.mxu1  ;;  %v2142_v18 = vadd.f32 %v5448_v4, %v1853_v35  ;;  %v1854_v54 = vadd.f32 %v5450_v56, %v5449_v41  ;;  %v2145_v5 = vadd.f32 %v5451_v13, %v1856_v9  ;;  %vm5300_vm11 = vcmp.lt.s32.totalorder %v2952_v22, 12  ;;  %v5458_v22 = vld [vmem:[#allocation18_spill] sm:$0xff]  ;;  %v5461_v9 = vld [vmem:[#allocation20_spill] sm:$0xff] }
 0x1a7   : > { %v2706_v42 = vpop.f32.mrf.mxu0  ;;  %v2531_v24 = vadd.f32 %v2472_v50, %v2138_v12  ;;  %v2819_v47 = vmax.f32 %v2795_v48, 0.0  ;;  %v2793_v17 = vadd.f32 %v5174_v14, %v2762_v36  ;;  %v2767_v16 = vadd.f32 %v4149_v39, %v2533_v2  ;;  %v5457_v48 = vld [vmem:[#allocation23_spill] sm:$0xff] }
 0x1a8   : > { %v4122_v61 = vpop.f32.mrf.mxu1  ;;  %v2850_v6 = vadd.s32 136, %v5158_v63  ;;  %v1857_v36 = vadd.f32 %v5457_v48, %v5456_v38  ;;  %v2143_v43 = vadd.f32 %v5458_v22, %v1854_v54  ;;  %v2856_v56 = vadd.s32 184, %v5158_v63  ;;  %v5467_v54 = vld [vmem:[#allocation24_spill] sm:$0xff] }
 0x1a9   : > { %v4150_v20 = vpop.f32.mrf.mxu0  ;;  %v2534_v15 = vadd.f32 %v4122_v61, %v2141_v53  ;;  %v3228_v23 = vsel %vm5242_vm8, %v2819_v47, 0.0  ;;  %v2817_v10 = vmax.f32 %v2793_v17, 0.0  ;;  %v2765_v40 = vadd.f32 %v2706_v42, %v2531_v24  ;;  %v5455_v42 = vld [vmem:[#allocation21_spill] sm:$0xff] }
 0x1aa   : > { %v2475_v1 = vpop.f32.mrf.mxu1  ;;  %v3738_v0 = vpack.c.bf16 %v3228_v23, %v2818_v57  ;;  %v2798_v55 = vadd.f32 %v5174_v14, %v2767_v16  ;;  %v1859_v12 = vadd.f32 %v5455_v42, %v5454_v28  ;;  %v2994_v47 = vand.u32 15, %v5284_v37  ;;  %v5459_v57 = vld [vmem:[#allocation10_spill] sm:$0xff] }
 0x1ab   : > { %v2709_v11 = vpop.f32.mrf.mxu0  ;;  %v2768_v31 = vadd.f32 %v4150_v20, %v2534_v15  ;;  %v3226_v45 = vsel %vm5259_vm9, %v2817_v10, 0.0  ;;  %v2532_v33 = vadd.f32 %v2475_v1, %v2139_v46  ;;  %v2796_v27 = vadd.f32 %v5174_v14, %v2765_v40  ;;  %v5460_v15 = vld [vmem:[#allocation25_spill] sm:$0xff]  ;;  %v5464_v40 = vld [vmem:[#allocation27_spill] sm:$0xff] }
 0x1ac   : > { %v4125_v58 = vpop.f32.mrf.mxu1  ;;  %3774 = vst [vmem:[%s5223_s6 + $0x28] sm:$0xff] %v3738_v0   ;;  %v3733_v34 = vpack.c.bf16 %v3226_v45, %v2816_v51  ;;  %v2822_v50 = vmax.f32 %v2798_v55, 0.0  ;;  %v2980_v44 = vand.u32 15, %v2850_v6  ;;  %v1860_v49 = vadd.f32 %v5460_v15, %v5459_v57  ;;  %v5463_v0 = vld [vmem:[#allocation11_spill] sm:$0xff] }
 0x1ad   : > { %v4153_v25 = vpop.f32.mrf.mxu0  ;;  %v2799_v39 = vadd.f32 %v5174_v14, %v2768_v31  ;;  %v2537_v7 = vadd.f32 %v4125_v58, %v2144_v26  ;;  %v2766_v60 = vadd.f32 %v2709_v11, %v2532_v33  ;;  %v2820_v26 = vmax.f32 %v2796_v27, 0.0 }
 0x1ae   : > { %v2488_v30 = vpop.f32.mrf.mxu1  ;;  %3773 = vst [vmem:[%s5223_s6 + $0x20] sm:$0xff] %v3733_v34   ;;  %v2148_v23 = vadd.f32 %v5461_v9, %v1859_v12  ;;  %v2146_v10 = vadd.f32 %v5462_v3, %v1857_v36  ;;  %v1858_v31 = vadd.f32 %v5464_v40, %v5463_v0  ;;  %vm5328_vm12 = vcmp.lt.s32.totalorder %v2994_v47, 12 }
 0x1af   : > { %v2722_v62 = vpop.f32.mrf.mxu0  ;;  %v2823_v29 = vmax.f32 %v2799_v39, 0.0  ;;  %v2535_v2 = vadd.f32 %v2488_v30, %v2142_v18  ;;  %v2797_v20 = vadd.f32 %v5174_v14, %v2766_v60  ;;  %v2771_v53 = vadd.f32 %v4153_v25, %v2537_v7 }
 0x1b0   : > { %v4126_v32 = vpop.f32.mrf.mxu1  ;;  %v2149_v34 = vadd.f32 %v5467_v54, %v1860_v49  ;;  %vm3162_vm13 = vcmp.lt.s32.totalorder %v2980_v44, 12  ;;  %v2854_v30 = vadd.s32 168, %v5158_v63  ;;  %v3022_v38 = vand.u32 15, %v2856_v56 }
 0x1b1   : > { %v4154_v21 = vpop.f32.mrf.mxu0  ;;  %v3232_v8 = vsel %vm5272_vm10, %v2823_v29, 0.0  ;;  %v2538_v35 = vadd.f32 %v4126_v32, %v2145_v5  ;;  %v2821_v16 = vmax.f32 %v2797_v20, 0.0  ;;  %v2769_v61 = vadd.f32 %v2722_v62, %v2535_v2 }
 0x1b2   : > { %v3748_v17 = vpack.c.bf16 %v3232_v8, %v2822_v50  ;;  %v2491_v11 = vpop.f32.mrf.mxu1  ;;  %v2802_v1 = vadd.f32 %v5174_v14, %v2771_v53  ;;  %vm3168_vm14 = vcmp.lt.s32.totalorder %v3022_v38, 12 }
 0x1b3   : > { %v2725_v24 = vpop.f32.mrf.mxu0  ;;  %v2772_v52 = vadd.f32 %v4154_v21, %v2538_v35  ;;  %v2536_v19 = vadd.f32 %v2491_v11, %v2143_v43  ;;  %v3230_v37 = vsel %vm5300_vm11, %v2821_v16, 0.0  ;;  %v2800_v55 = vadd.f32 %v5174_v14, %v2769_v61  ;;  %v5468_v21 = vld [vmem:[#allocation26_spill] sm:$0xff] }
 0x1b4   : > { %3776 = vst [vmem:[%s5223_s6 + $0x38] sm:$0xff] %v3748_v17   ;;  %v4129_v25 = vpop.f32.mrf.mxu1  ;;  %v3743_v4 = vpack.c.bf16 %v3230_v37, %v2820_v26  ;;  %v2826_v5 = vmax.f32 %v2802_v1, 0.0  ;;  %v2147_v6 = vadd.f32 %v5468_v21, %v1858_v31 }
 0x1b5   : > { %v4157_v46 = vpop.f32.mrf.mxu0  ;;  %v2803_v18 = vadd.f32 %v5174_v14, %v2772_v52  ;;  %v2770_v45 = vadd.f32 %v2725_v24, %v2536_v19  ;;  %v2541_v58 = vadd.f32 %v4129_v25, %v2148_v23  ;;  %v2824_v27 = vmax.f32 %v2800_v55, 0.0 }
 0x1b6   : > { %v2504_v62 = vpop.f32.mrf.mxu1  ;;  %3775 = vst [vmem:[%s5223_s6 + $0x30] sm:$0xff] %v3743_v4   ;;  %v3008_v24 = vand.u32 15, %v2854_v30 }
 0x1b7   : > { %v2738_v51 = vpop.f32.mrf.mxu0  ;;  %v2827_v39 = vmax.f32 %v2803_v18, 0.0  ;;  %v2801_v7 = vadd.f32 %v5174_v14, %v2770_v45  ;;  %v2539_v13 = vadd.f32 %v2504_v62, %v2146_v10  ;;  %v2775_v60 = vadd.f32 %v4157_v46, %v2541_v58 }
 0x1b8   : > { %v4130_v59 = vpop.f32.mrf.mxu1  ;;  %vm3166_vm15 = vcmp.lt.s32.totalorder %v3008_v24, 12 }
 0x1b9   : > { %v4158_v41 = vpop.f32.mrf.mxu0  ;;  %v3236_v28 = vsel %vm5328_vm12, %v2827_v39, 0.0  ;;  %v2825_v42 = vmax.f32 %v2801_v7, 0.0  ;;  %v2542_v12 = vadd.f32 %v4130_v59, %v2149_v34  ;;  %v2773_v2 = vadd.f32 %v2738_v51, %v2539_v13 }
 0x1ba   : > { %v3758_v29 = vpack.c.bf16 %v3236_v28, %v2826_v5  ;;  %v2507_v48 = vpop.f32.mrf.mxu1  ;;  %v2806_v32 = vadd.f32 %v5174_v14, %v2775_v60 }
 0x1bb   : > { %v2741_v36 = vpop.f32.mrf.mxu0  ;;  %v3234_v50 = vsel %vm3162_vm13, %v2825_v42, 0.0  ;;  %v2776_v20 = vadd.f32 %v4158_v41, %v2542_v12  ;;  %v2540_v53 = vadd.f32 %v2507_v48, %v2147_v6  ;;  %v2804_v8 = vadd.f32 %v5174_v14, %v2773_v2 }
 0x1bc   : > { %3778 = vst [vmem:[%s5223_s6 + $0x48] sm:$0xff] %v3758_v29   ;;  %v3753_v63 = vpack.c.bf16 %v3234_v50, %v2824_v27  ;;  %v2830_v17 = vmax.f32 %v2806_v32, 0.0 }
 0x1bd   : > { %v2807_v22 = vadd.f32 %v5174_v14, %v2776_v20  ;;  %v2774_v43 = vadd.f32 %v2741_v36, %v2540_v53  ;;  %v2828_v11 = vmax.f32 %v2804_v8, 0.0 }
 0x1be   : > { %3777 = vst [vmem:[%s5223_s6 + $0x40] sm:$0xff] %v3753_v63  }
 0x1bf   : > { %v2831_v35 = vmax.f32 %v2807_v22, 0.0  ;;  %v2805_v47 = vadd.f32 %v5174_v14, %v2774_v43 }
 0x1c1   : > { %v3240_v16 = vsel %vm3168_vm14, %v2831_v35, 0.0  ;;  %v2829_v61 = vmax.f32 %v2805_v47, 0.0 }
 0x1c2   : > { %v3768_v44 = vpack.c.bf16 %v3240_v16, %v2830_v17 }
 0x1c3   : > { %v3238_v46 = vsel %vm3166_vm15, %v2829_v61, 0.0 }
 0x1c4   : > { %3780 = vst [vmem:[%s5223_s6 + $0x58] sm:$0xff] %v3768_v44   ;;  %v3763_v57 = vpack.c.bf16 %v3238_v46, %v2828_v11 }
 0x1c6   : > { %3779 = vst [vmem:[%s5223_s6 + $0x50] sm:$0xff] %v3763_v57  }
 0x1c7   : > { %4314 = shalt.err (!%p4311_p3)
}
 0x1c8   : > { %s4315_s26 = scalar_lea.hbm %s5351_s17, 1536  ;;  %s4319_s29 = scalar_lea.hbm %s5402_s3, 3072 }
 0x1c9   : > { %p4316_p4 = scmp.ne.s32.totalorder %s5351_s17, %s4315_s26  ;;  %p4320_p9 = scmp.lt.s32.totalorder %s5351_s17, %s5402_s3 }
 0x1ca   : > { %p4321_p10 = scmp.lt.s32.totalorder %s4319_s29, %s4315_s26 }
 0x1cb   : > { %p4317_p7 = pnand %p4316_p4, %p4424_p5 }
 0x1cc   : > { %p4322_p11 = por %p4321_p10, %p4320_p9 }
 0x1cd   : > { %p4318_p8 = pneg %p4317_p7 }
 0x1cf   : > { %p4323_p12 = pnand %p4322_p11, %p4318_p8 }
 0x1d1   : > { %4326 = shalt.err (!%p4323_p12)
}
 0x1d2   : > { %s4364_s4 = smov 64   ;;  %s4365_s5 = smov 4  }
 0x1d3   : > { %4176 = dma.vmem_to_hbm [thread:$0]  (%p4424_p5), %s5354_s8, 1536, %s5351_s17, %s5359_s16, %s4364_s4, %s4364_s4, %s4365_s5  }
 0x1d4 PF: > { %p4182_p13 = scmp.ge.s32.totalorder %s4361_s15, 2  ;;  %s3390_s6 = sand.u32 1, %s4349_s12  }
 0x1d5   : > { %s3391_s7 = scalar_lea.sflag [#allocation3], %s3390_s6 }
 0x1d6   : > { %p4179_p0 = pnand %p4182_p13, %p4428_p6 }
 0x1d8   : > { %p4180_p1 = pneg %p4179_p0 }
 0x1da   : > { %4344 = dma.done.wait (%p4180_p1), %s3391_s7, 1536  }
 0x1db   : > { %4346 = vsyncadd (%p4180_p1), %s3391_s7, 4294965760  ;;  %p13_p2 = scmp.ge.s32.totalorder %s4411_s18, 4   ;;  %s5469_s12 = smov %s4353_s13 }
 0x1dc   : > { %s5470_s13 = smov %s4357_s14  ;;  %s5471_s14 = smov %s4422_s21 }
 0x1dd   : > { %s5472_s15 = smov %s4411_s18  ;;  %15 = sbr.rel (!%p13_p2) target bundleno = 3 (0x3), region = 75 }
 0x1e2   :  { %3396 = vsyncpa [#allocation3], 1 }
 0x1e3   :  { %3398 = vsyncpa [#allocation3 + $0x1], 1 }

</bundles_post_ra>
